<compile_context>
chip_gen: v7x
topology: tpu7x:2x2x1
jax: 0.10.0
libtpu: 0.0.40
codegen_flags: <defaults>
</compile_context>

<pallas_src>
import jax
import jax.numpy as jnp
from jax import lax
from jax.experimental import pallas as pl
from jax.experimental.pallas import tpu as pltpu  # noqa: F401  (TPU backend)

# ------------------------- configuration -------------------------
B = 2            # batch (graphs per set)
S = 8            # sequence length (graph nodes)
H = 32           # bert hidden size
NH = 4           # attention heads
DH = H // NH     # head dim
FF = 4 * H       # feed-forward hidden (= 128)
N_TOPICS = 5
N_STAGES = 6
VOCAB = 20
N_SEG = 4

NG = 2            # positive / negative graph sets (fused in one step)
PS = B * S        # rows per set (16)
NROWS = NG * PS   # 32 rows processed by the single kernel invocation
NGRAPHS = NG * B  # 4 graphs pooled
LANES = 128
OUT_ROWS = 16     # packed output rows (gv(4) | rec(2) | topic(2) | stage(2) | pad)
SLAB_ROWS = 64    # packed parameter slab rows

assert FF == LANES and H <= LANES and NROWS % 8 == 0

# rows inside the packed parameter slab
R_BQ, R_BK, R_BV, R_BO, R_B1, R_B2, R_LN1G, R_LN1B, R_LN2G, R_LN2B = range(10)
R_WDR = 16                    # rows 16..47  : wdr   (H, N_TOPICS)
R_BDR = R_WDR + H             # row  48      : bdr   (1, N_TOPICS)
R_WSL = R_BDR + 1             # rows 49..53  : wsl   (N_TOPICS, N_STAGES)
R_BSL = R_WSL + N_TOPICS      # row  54      : bsl   (1, N_STAGES)
R_WREC = R_BSL + 1            # rows 55..59  : wrec  (N_TOPICS, H)
assert R_WREC + N_TOPICS <= SLAB_ROWS


# ------------------------- in-kernel helpers -------------------------
def _layernorm(x, g, b, eps=1e-12):   # BERT-style eps
    mu = jnp.mean(x, axis=-1, keepdims=True)
    var = jnp.mean((x - mu) ** 2, axis=-1, keepdims=True)
    return (x - mu) * lax.rsqrt(var + eps) * g + b


def _gelu(x):
    # TODO(synk): tanh approximation (PyTorch default GELU is erf-based).
    c = 0.7978845608028654  # sqrt(2/pi)
    return 0.5 * x * (1.0 + jnp.tanh(c * (x + 0.044715 * x * x * x)))


# ------------------------- fused CORAL kernel -------------------------
def coral_kernel(h_ref, mask_ref, wqkvo_ref, w1_ref, w2_ref, slab_ref, out_ref):
    f32 = jnp.float32
    bf16 = jnp.bfloat16

    h = h_ref[...]                      # (NROWS, H)      bf16, pos+neg graphs
    mask = mask_ref[...]                # (NROWS, NROWS)  f32, block-diag attention bias

    def srow(r, n):                     # row r of the parameter slab, first n lanes
        return slab_ref[r:r + 1, 0:n]   # (1, n)

    bq, bk, bv, bo = srow(R_BQ, H), srow(R_BK, H), srow(R_BV, H), srow(R_BO, H)
    b1, b2 = srow(R_B1, FF), srow(R_B2, H)
    ln1g, ln1b = srow(R_LN1G, H), srow(R_LN1B, H)
    ln2g, ln2b = srow(R_LN2G, H), srow(R_LN2B, H)

    # ---- fused Q|K|V projection: ONE lane-dense MXU push ----
    qkv = jnp.dot(h, wqkvo_ref[:, 0:3 * H], preferred_element_type=f32)   # (NROWS, 3H)
    scale = 1.0 / (DH ** 0.5)
    q = (qkv[:, 0 * H:1 * H] + bq) * scale          # softmax scale folded in once
    k = qkv[:, 1 * H:2 * H] + bk
    v = qkv[:, 2 * H:3 * H] + bv
    wo = wqkvo_ref[:, 3 * H:4 * H]                  # (H, H) bf16, output projection

    # ---- all-heads attention: lane-masked Q stacked head-major; K/V unreplicated ----
    lane_ids = lax.broadcasted_iota(jnp.int32, (NH, 1, H), 2)
    head_ids = lax.broadcasted_iota(jnp.int32, (NH, 1, H), 0)
    head_mask = ((lane_ids >= head_ids * DH) &
                 (lane_ids < (head_ids + 1) * DH)).astype(f32)            # (NH, 1, H)

    q2 = (q[None] * head_mask).reshape(NH * NROWS, H)                     # (NH*NROWS, H)
    s = lax.dot_general(q2, k, (((1,), (1,)), ((), ())),
                        preferred_element_type=f32)                       # (NH*NROWS, NROWS)
    s = s.reshape(NH, NROWS, NROWS) + mask[None]
    s = s - jnp.max(s, axis=-1, keepdims=True)
    p = jnp.exp(s)
    p = p / jnp.sum(p, axis=-1, keepdims=True)
    ctx = lax.dot_general(p.reshape(NH * NROWS, NROWS), v,
                          (((1,), (0,)), ((), ())),
                          preferred_element_type=f32)                     # (NH*NROWS, H)
    attn = jnp.sum(ctx.reshape(NH, NROWS, H) * head_mask, axis=0)         # (NROWS, H)
    attn = jnp.dot(attn.astype(bf16), wo, preferred_element_type=f32) + bo

    # ---- FFN + post-LayerNorms (f32 math, bf16 matmul operands) ----
    x1 = _layernorm(h.astype(f32) + attn, ln1g, ln1b)
    ffh = _gelu(jnp.dot(x1.astype(bf16), w1_ref[...], preferred_element_type=f32) + b1)
    ff = jnp.dot(ffh.astype(bf16), w2_ref[...], preferred_element_type=f32) + b2
    x2 = _layernorm(x1 + ff, ln2g, ln2b)

    # ---- per-graph mean pooling as one small matmul (keeps everything 2-D) ----
    rows = lax.broadcasted_iota(jnp.int32, (NGRAPHS, NROWS), 0)
    cols = lax.broadcasted_iota(jnp.int32, (NGRAPHS, NROWS), 1)
    pool = jnp.where((cols >= rows * S) & (cols < (rows + 1) * S),
                     1.0 / S, 0.0).astype(f32)                            # (NGRAPHS, NROWS)
    gv = jnp.dot(pool, x2, preferred_element_type=f32)                    # (NGRAPHS, H)

    # ---- CORAL heads: only the positive graphs (rows 0:B of gv) ----
    gv_pos = gv[0:B, :]
    wdr = slab_ref[R_WDR:R_WDR + H, 0:N_TOPICS]
    bdr = slab_ref[R_BDR:R_BDR + 1, 0:N_TOPICS]
    wsl = slab_ref[R_WSL:R_WSL + N_TOPICS, 0:N_STAGES]
    bsl = slab_ref[R_BSL:R_BSL + 1, 0:N_STAGES]
    wrec = slab_ref[R_WREC:R_WREC + N_TOPICS, 0:H]

    logits = jnp.dot(gv_pos, wdr, preferred_element_type=f32) + bdr       # (B, N_TOPICS)
    stage = jnp.dot(logits, wsl, preferred_element_type=f32) + bsl        # (B, N_STAGES)
    m = jnp.max(logits, axis=1, keepdims=True)
    e = jnp.exp(logits - m)
    topic = e / jnp.sum(e, axis=1, keepdims=True)                         # softmax dim=1
    rec = jnp.dot(topic, wrec, preferred_element_type=f32)                # no bias

    # ---- single lane-dense packed store ----
    def pad_lanes(a):
        r, c = a.shape
        if c == LANES:
            return a
        return jnp.concatenate([a, jnp.zeros((r, LANES - c), f32)], axis=1)

    out_ref[...] = jnp.concatenate(
        [pad_lanes(gv),            # rows 0:4  (pos gv rows 0:2, neg gv rows 2:4)
         pad_lanes(rec),           # rows 4:6
         pad_lanes(topic),         # rows 6:8
         pad_lanes(stage),         # rows 8:10
         jnp.zeros((OUT_ROWS - (NGRAPHS + 3 * B), LANES), f32)], axis=0)


def coral_pallas(h0, mask, wqkvo, w1, w2, slab):
    # grid-less call: every operand lives whole in VMEM (total footprint ~70 KB).
    return pl.pallas_call(
        coral_kernel,
        out_shape=jax.ShapeDtypeStruct((OUT_ROWS, LANES), jnp.float32),
    )(h0, mask, wqkvo, w1, w2, slab)


# ------------------------- parameters (deterministic) -------------------------
def init_params(key):
    names_shapes = [
        ("tok_emb", (VOCAB, H)), ("seg_emb", (N_SEG, H)), ("pos_emb", (S, H)),
        ("wq", (H, H)), ("bq", (1, H)), ("wk", (H, H)), ("bk", (1, H)),
        ("wv", (H, H)), ("bv", (1, H)), ("wo", (H, H)), ("bo", (1, H)),
        ("w1", (H, FF)), ("b1", (1, FF)), ("w2", (FF, H)), ("b2", (1, H)),
        ("wdr", (H, N_TOPICS)), ("bdr", (1, N_TOPICS)),
        ("wsl", (N_TOPICS, N_STAGES)), ("bsl", (1, N_STAGES)),
        ("wrec", (N_TOPICS, H)),
    ]
    keys = jax.random.split(key, len(names_shapes))
    p = {n: (0.05 * jax.random.normal(k, s, jnp.float32)).astype(jnp.float32)
         for (n, s), k in zip(names_shapes, keys)}
    p["ln1g"] = jnp.ones((1, H), jnp.float32)
    p["ln1b"] = jnp.zeros((1, H), jnp.float32)
    p["ln2g"] = jnp.ones((1, H), jnp.float32)
    p["ln2b"] = jnp.zeros((1, H), jnp.float32)
    return p


# ------------------------- CORAL forward -------------------------
def coral_forward(params, x, neg_x, segment_label, neg_segment_label, adj_mat, neg_adj_mat):
    p = params

    def embed(tokens, segment):
        # token / segment / position embedding gathers stay in plain JAX glue
        return (p["tok_emb"][tokens] + p["seg_emb"][segment]
                + p["pos_emb"][None, :, :]).reshape(PS, H)

    # positive + negative graphs fused along the row axis (bf16 MXU operand)
    h0 = jnp.concatenate([embed(x, segment_label),
                          embed(neg_x, neg_segment_label)],
                         axis=0).astype(jnp.bfloat16)                     # (NROWS, H)

    def pair_bias(adj):
        a = (adj.astype(jnp.float32) > 0).astype(jnp.float32)             # (B, S, S)
        eye_b = jnp.eye(B, dtype=jnp.float32)
        allow = (eye_b[:, None, :, None] * a[:, :, None, :]).reshape(PS, PS)
        return jnp.where(allow > 0, 0.0, -1e9).astype(jnp.float32)        # (PS, PS)

    # block-diagonal over all NG*B graphs: no pos<->neg nor cross-graph attention
    mask = jnp.full((NROWS, NROWS), -1e9, jnp.float32)
    mask = mask.at[0:PS, 0:PS].set(pair_bias(adj_mat))
    mask = mask.at[PS:NROWS, PS:NROWS].set(pair_bias(neg_adj_mat))

    # lane-major packed attention weights: [wq | wk | wv | wo] -> (H, 4H) = (32, 128)
    wqkvo = jnp.concatenate([p["wq"], p["wk"], p["wv"], p["wo"]],
                            axis=1).astype(jnp.bfloat16)
    w1 = p["w1"].astype(jnp.bfloat16)                                     # (H, FF)
    w2 = p["w2"].astype(jnp.bfloat16)                                     # (FF, H)

    # one f32 (64, 128) slab: biases, LayerNorm params and all CORAL-head tensors
    slab = jnp.zeros((SLAB_ROWS, LANES), jnp.float32)

    def put(s, r, arr):
        return s.at[r:r + arr.shape[0], 0:arr.shape[1]].set(arr)

    for r, name in [(R_BQ, "bq"), (R_BK, "bk"), (R_BV, "bv"), (R_BO, "bo"),
                    (R_B1, "b1"), (R_B2, "b2"),
                    (R_LN1G, "ln1g"), (R_LN1B, "ln1b"),
                    (R_LN2G, "ln2g"), (R_LN2B, "ln2b"),
                    (R_WDR, "wdr"), (R_BDR, "bdr"),
                    (R_WSL, "wsl"), (R_BSL, "bsl"), (R_WREC, "wrec")]:
        slab = put(slab, r, p[name])

    out = coral_pallas(h0, mask, wqkvo, w1, w2, slab)

    graph_vec = out[0:B, 0:H]
    neg_graph_vec = out[B:2 * B, 0:H]
    reconstructed_vec = out[NGRAPHS:NGRAPHS + B, 0:H]
    topic_dist = out[NGRAPHS + B:NGRAPHS + 2 * B, 0:N_TOPICS]
    stage_vec = out[NGRAPHS + 2 * B:NGRAPHS + 3 * B, 0:N_STAGES]
    return reconstructed_vec, graph_vec, neg_graph_vec, topic_dist, stage_vec


# ------------------------- main -------------------------
if __name__ == "__main__":
    key = jax.random.PRNGKey(0)
    k_par, k_x, k_nx, k_seg, k_nseg, k_adj, k_nadj = jax.random.split(key, 7)

    params = init_params(k_par)

    x = jax.random.randint(k_x, (B, S), 0, VOCAB, jnp.int32)
    neg_x = jax.random.randint(k_nx, (B, S), 0, VOCAB, jnp.int32)
    segment_label = jax.random.randint(k_seg, (B, S), 0, N_SEG, jnp.int32)
    neg_segment_label = jax.random.randint(k_nseg, (B, S), 0, N_SEG, jnp.int32)

    eye = jnp.eye(S, dtype=jnp.float32)[None]
    adj_mat = jnp.clip((jax.random.uniform(k_adj, (B, S, S)) > 0.5).astype(jnp.float32) + eye, 0, 1)
    neg_adj_mat = jnp.clip((jax.random.uniform(k_nadj, (B, S, S)) > 0.5).astype(jnp.float32) + eye, 0, 1)

    outs = jax.jit(coral_forward)(params, x, neg_x, segment_label,
                                  neg_segment_label, adj_mat, neg_adj_mat)
    outs = jax.block_until_ready(outs)

    reconstructed_vec, graph_vec, neg_graph_vec, topic_dist, stage_vec = outs
    assert reconstructed_vec.shape == (B, H)
    assert graph_vec.shape == (B, H)
    assert neg_graph_vec.shape == (B, H)
    assert topic_dist.shape == (B, N_TOPICS)
    assert stage_vec.shape == (B, N_STAGES)
    # softmax rows sum to 1
    assert bool(jnp.all(jnp.abs(jnp.sum(topic_dist, axis=1) - 1.0) < 1e-5))
    assert bool(jnp.all(jnp.isfinite(reconstructed_vec)))

    print("KERNEL_OK")
</pallas_src>

<mosaic_0001>
module attributes {stable_mosaic.version = 11 : i64} {
  func.func @coral_kernel(%arg0: memref<32x32xbf16, #tpu.memory_space<vmem>>, %arg1: memref<32x32xf32, #tpu.memory_space<vmem>>, %arg2: memref<32x128xbf16, #tpu.memory_space<vmem>>, %arg3: memref<32x128xbf16, #tpu.memory_space<vmem>>, %arg4: memref<128x32xbf16, #tpu.memory_space<vmem>>, %arg5: memref<64x128xf32, #tpu.memory_space<vmem>>, %arg6: memref<16x128xf32, #tpu.memory_space<vmem>>) attributes {dimension_semantics = [], scalar_prefetch = 0 : i64, scratch_operands = 0 : i64, tpu.core_type = #tpu.core_type<tc>} {
    %c0 = arith.constant 0 : index
    %c0_0 = arith.constant 0 : index
    %0 = vector.load %arg0[%c0, %c0_0] : memref<32x32xbf16, #tpu.memory_space<vmem>>, vector<32x32xbf16>
    %c0_1 = arith.constant 0 : index
    %c0_2 = arith.constant 0 : index
    %1 = vector.load %arg1[%c0_1, %c0_2] : memref<32x32xf32, #tpu.memory_space<vmem>>, vector<32x32xf32>
    %c0_3 = arith.constant 0 : index
    %c0_4 = arith.constant 0 : index
    %2 = vector.load %arg5[%c0_3, %c0_4] : memref<64x128xf32, #tpu.memory_space<vmem>>, vector<1x32xf32>
    %c1 = arith.constant 1 : index
    %c0_5 = arith.constant 0 : index
    %3 = vector.load %arg5[%c1, %c0_5] : memref<64x128xf32, #tpu.memory_space<vmem>>, vector<1x32xf32>
    %c2 = arith.constant 2 : index
    %c0_6 = arith.constant 0 : index
    %4 = vector.load %arg5[%c2, %c0_6] : memref<64x128xf32, #tpu.memory_space<vmem>>, vector<1x32xf32>
    %c3 = arith.constant 3 : index
    %c0_7 = arith.constant 0 : index
    %5 = vector.load %arg5[%c3, %c0_7] : memref<64x128xf32, #tpu.memory_space<vmem>>, vector<1x32xf32>
    %c4 = arith.constant 4 : index
    %c0_8 = arith.constant 0 : index
    %6 = vector.load %arg5[%c4, %c0_8] : memref<64x128xf32, #tpu.memory_space<vmem>>, vector<1x128xf32>
    %c5 = arith.constant 5 : index
    %c0_9 = arith.constant 0 : index
    %7 = vector.load %arg5[%c5, %c0_9] : memref<64x128xf32, #tpu.memory_space<vmem>>, vector<1x32xf32>
    %c6 = arith.constant 6 : index
    %c0_10 = arith.constant 0 : index
    %8 = vector.load %arg5[%c6, %c0_10] : memref<64x128xf32, #tpu.memory_space<vmem>>, vector<1x32xf32>
    %c7 = arith.constant 7 : index
    %c0_11 = arith.constant 0 : index
    %9 = vector.load %arg5[%c7, %c0_11] : memref<64x128xf32, #tpu.memory_space<vmem>>, vector<1x32xf32>
    %c8 = arith.constant 8 : index
    %c0_12 = arith.constant 0 : index
    %10 = vector.load %arg5[%c8, %c0_12] : memref<64x128xf32, #tpu.memory_space<vmem>>, vector<1x32xf32>
    %c9 = arith.constant 9 : index
    %c0_13 = arith.constant 0 : index
    %11 = vector.load %arg5[%c9, %c0_13] : memref<64x128xf32, #tpu.memory_space<vmem>>, vector<1x32xf32>
    %c0_14 = arith.constant 0 : index
    %c0_15 = arith.constant 0 : index
    %12 = vector.load %arg2[%c0_14, %c0_15] : memref<32x128xbf16, #tpu.memory_space<vmem>>, vector<32x96xbf16>
    %cst = arith.constant dense<0.000000e+00> : vector<32x96xf32>
    %13 = tpu.matmul %0, %12, %cst {dimension_numbers = #tpu.dot_dimension_numbers<[1], [0], [0], [1], [0, 0, 1, 1], [], []>} : vector<32x32xbf16>, vector<32x96xbf16>, vector<32x96xf32> -> vector<32x96xf32>
    %14 = vector.extract_strided_slice %13 {offsets = [0, 0], sizes = [32, 32], strides = [1, 1]} : vector<32x96xf32> to vector<32x32xf32>
    %15 = vector.broadcast %2 : vector<1x32xf32> to vector<32x32xf32>
    %16 = arith.addf %14, %15 : vector<32x32xf32>
    %cst_16 = arith.constant 0.353553385 : f32
    %17 = vector.broadcast %cst_16 : f32 to vector<32x32xf32>
    %18 = arith.mulf %16, %17 : vector<32x32xf32>
    %19 = vector.extract_strided_slice %13 {offsets = [0, 32], sizes = [32, 32], strides = [1, 1]} : vector<32x96xf32> to vector<32x32xf32>
    %20 = vector.broadcast %3 : vector<1x32xf32> to vector<32x32xf32>
    %21 = arith.addf %19, %20 : vector<32x32xf32>
    %22 = vector.extract_strided_slice %13 {offsets = [0, 64], sizes = [32, 32], strides = [1, 1]} : vector<32x96xf32> to vector<32x32xf32>
    %23 = vector.broadcast %4 : vector<1x32xf32> to vector<32x32xf32>
    %24 = arith.addf %22, %23 : vector<32x32xf32>
    %c0_17 = arith.constant 0 : index
    %c96 = arith.constant 96 : index
    %25 = vector.load %arg2[%c0_17, %c96] : memref<32x128xbf16, #tpu.memory_space<vmem>>, vector<32x32xbf16>
    %26 = tpu.iota {dimensions = array<i32: 2>} : vector<4x1x32xi32>
    %27 = tpu.iota {dimensions = array<i32: 0>} : vector<4x1x32xi32>
    %c8_i32 = arith.constant 8 : i32
    %28 = vector.broadcast %c8_i32 : i32 to vector<4x1x32xi32>
    %29 = arith.muli %27, %28 : vector<4x1x32xi32>
    %30 = arith.cmpi sge, %26, %29 : vector<4x1x32xi32>
    %c1_i32 = arith.constant 1 : i32
    %31 = vector.broadcast %c1_i32 : i32 to vector<4x1x32xi32>
    %32 = arith.addi %27, %31 : vector<4x1x32xi32>
    %c8_i32_18 = arith.constant 8 : i32
    %33 = vector.broadcast %c8_i32_18 : i32 to vector<4x1x32xi32>
    %34 = arith.muli %32, %33 : vector<4x1x32xi32>
    %35 = arith.cmpi slt, %26, %34 : vector<4x1x32xi32>
    %36 = arith.andi %30, %35 : vector<4x1x32xi1>
    %37 = arith.extui %36 : vector<4x1x32xi1> to vector<4x1x32xi32>
    %38 = arith.sitofp %37 : vector<4x1x32xi32> to vector<4x1x32xf32>
    %39 = vector.shape_cast %18 : vector<32x32xf32> to vector<1x32x32xf32>
    %40 = vector.broadcast %39 : vector<1x32x32xf32> to vector<4x32x32xf32>
    %41 = vector.broadcast %38 : vector<4x1x32xf32> to vector<4x32x32xf32>
    %42 = arith.mulf %40, %41 : vector<4x32x32xf32>
    %43 = vector.shape_cast %42 : vector<4x32x32xf32> to vector<128x32xf32>
    %cst_19 = arith.constant dense<0.000000e+00> : vector<128x32xf32>
    %44 = tpu.matmul %43, %21, %cst_19 {dimension_numbers = #tpu.dot_dimension_numbers<[1], [1], [0], [0], [0, 0, 1, 0], [], []>} : vector<128x32xf32>, vector<32x32xf32>, vector<128x32xf32> -> vector<128x32xf32>
    %45 = vector.shape_cast %44 : vector<128x32xf32> to vector<4x32x32xf32>
    %46 = vector.shape_cast %1 : vector<32x32xf32> to vector<1x32x32xf32>
    %47 = vector.broadcast %46 : vector<1x32x32xf32> to vector<4x32x32xf32>
    %48 = arith.addf %45, %47 : vector<4x32x32xf32>
    %cst_20 = arith.constant dense<0xFF800000> : vector<4x32xf32>
    %49 = vector.multi_reduction <maximumf>, %48, %cst_20 [2] : vector<4x32x32xf32> to vector<4x32xf32>
    %50 = vector.shape_cast %49 : vector<4x32xf32> to vector<4x32x1xf32>
    %51 = vector.broadcast %50 : vector<4x32x1xf32> to vector<4x32x32xf32>
    %52 = arith.subf %48, %51 : vector<4x32x32xf32>
    %53 = math.exp %52 : vector<4x32x32xf32>
    %cst_21 = arith.constant dense<0.000000e+00> : vector<4x32xf32>
    %54 = vector.multi_reduction <add>, %53, %cst_21 [2] : vector<4x32x32xf32> to vector<4x32xf32>
    %55 = vector.shape_cast %54 : vector<4x32xf32> to vector<4x32x1xf32>
    %56 = vector.broadcast %55 : vector<4x32x1xf32> to vector<4x32x32xf32>
    %57 = arith.divf %53, %56 : vector<4x32x32xf32>
    %58 = vector.shape_cast %57 : vector<4x32x32xf32> to vector<128x32xf32>
    %cst_22 = arith.constant dense<0.000000e+00> : vector<128x32xf32>
    %59 = tpu.matmul %58, %24, %cst_22 {dimension_numbers = #tpu.dot_dimension_numbers<[1], [0], [0], [1], [0, 0, 1, 1], [], []>} : vector<128x32xf32>, vector<32x32xf32>, vector<128x32xf32> -> vector<128x32xf32>
    %60 = vector.shape_cast %59 : vector<128x32xf32> to vector<4x32x32xf32>
    %61 = vector.broadcast %38 : vector<4x1x32xf32> to vector<4x32x32xf32>
    %62 = arith.mulf %60, %61 : vector<4x32x32xf32>
    %cst_23 = arith.constant dense<0.000000e+00> : vector<32x32xf32>
    %63 = vector.multi_reduction <add>, %62, %cst_23 [0] : vector<4x32x32xf32> to vector<32x32xf32>
    %64 = arith.truncf %63 : vector<32x32xf32> to vector<32x32xbf16>
    %cst_24 = arith.constant dense<0.000000e+00> : vector<32x32xf32>
    %65 = tpu.matmul %64, %25, %cst_24 {dimension_numbers = #tpu.dot_dimension_numbers<[1], [0], [0], [1], [0, 0, 1, 1], [], []>} : vector<32x32xbf16>, vector<32x32xbf16>, vector<32x32xf32> -> vector<32x32xf32>
    %66 = vector.broadcast %5 : vector<1x32xf32> to vector<32x32xf32>
    %67 = arith.addf %65, %66 : vector<32x32xf32>
    %68 = arith.extf %0 : vector<32x32xbf16> to vector<32x32xf32>
    %69 = arith.addf %68, %67 : vector<32x32xf32>
    %cst_25 = arith.constant dense<0.000000e+00> : vector<32xf32>
    %70 = vector.multi_reduction <add>, %69, %cst_25 [1] : vector<32x32xf32> to vector<32xf32>
    %71 = vector.shape_cast %70 : vector<32xf32> to vector<32x1xf32>
    %cst_26 = arith.constant 3.200000e+01 : f32
    %72 = vector.broadcast %cst_26 : f32 to vector<32x1xf32>
    %73 = arith.divf %71, %72 : vector<32x1xf32>
    %74 = vector.broadcast %73 : vector<32x1xf32> to vector<32x32xf32>
    %75 = arith.subf %69, %74 : vector<32x32xf32>
    %76 = arith.mulf %75, %75 : vector<32x32xf32>
    %cst_27 = arith.constant dense<0.000000e+00> : vector<32xf32>
    %77 = vector.multi_reduction <add>, %76, %cst_27 [1] : vector<32x32xf32> to vector<32xf32>
    %78 = vector.shape_cast %77 : vector<32xf32> to vector<32x1xf32>
    %cst_28 = arith.constant 3.200000e+01 : f32
    %79 = vector.broadcast %cst_28 : f32 to vector<32x1xf32>
    %80 = arith.divf %78, %79 : vector<32x1xf32>
    %81 = vector.broadcast %73 : vector<32x1xf32> to vector<32x32xf32>
    %82 = arith.subf %69, %81 : vector<32x32xf32>
    %cst_29 = arith.constant 9.99999996E-13 : f32
    %83 = vector.broadcast %cst_29 : f32 to vector<32x1xf32>
    %84 = arith.addf %80, %83 : vector<32x1xf32>
    %85 = math.rsqrt %84 : vector<32x1xf32>
    %86 = vector.broadcast %85 : vector<32x1xf32> to vector<32x32xf32>
    %87 = arith.mulf %82, %86 : vector<32x32xf32>
    %88 = vector.broadcast %8 : vector<1x32xf32> to vector<32x32xf32>
    %89 = arith.mulf %87, %88 : vector<32x32xf32>
    %90 = vector.broadcast %9 : vector<1x32xf32> to vector<32x32xf32>
    %91 = arith.addf %89, %90 : vector<32x32xf32>
    %92 = arith.truncf %91 : vector<32x32xf32> to vector<32x32xbf16>
    %c0_30 = arith.constant 0 : index
    %c0_31 = arith.constant 0 : index
    %93 = vector.load %arg3[%c0_30, %c0_31] : memref<32x128xbf16, #tpu.memory_space<vmem>>, vector<32x128xbf16>
    %cst_32 = arith.constant dense<0.000000e+00> : vector<32x128xf32>
    %94 = tpu.matmul %92, %93, %cst_32 {dimension_numbers = #tpu.dot_dimension_numbers<[1], [0], [0], [1], [0, 0, 1, 1], [], []>} : vector<32x32xbf16>, vector<32x128xbf16>, vector<32x128xf32> -> vector<32x128xf32>
    %95 = vector.broadcast %6 : vector<1x128xf32> to vector<32x128xf32>
    %96 = arith.addf %94, %95 : vector<32x128xf32>
    %cst_33 = arith.constant 5.000000e-01 : f32
    %97 = vector.broadcast %cst_33 : f32 to vector<32x128xf32>
    %98 = arith.mulf %97, %96 : vector<32x128xf32>
    %cst_34 = arith.constant 4.471500e-02 : f32
    %99 = vector.broadcast %cst_34 : f32 to vector<32x128xf32>
    %100 = arith.mulf %99, %96 : vector<32x128xf32>
    %101 = arith.mulf %100, %96 : vector<32x128xf32>
    %102 = arith.mulf %101, %96 : vector<32x128xf32>
    %103 = arith.addf %96, %102 : vector<32x128xf32>
    %cst_35 = arith.constant 0.797884583 : f32
    %104 = vector.broadcast %cst_35 : f32 to vector<32x128xf32>
    %105 = arith.mulf %104, %103 : vector<32x128xf32>
    %106 = math.tanh %105 : vector<32x128xf32>
    %cst_36 = arith.constant 1.000000e+00 : f32
    %107 = vector.broadcast %cst_36 : f32 to vector<32x128xf32>
    %108 = arith.addf %107, %106 : vector<32x128xf32>
    %109 = arith.mulf %98, %108 : vector<32x128xf32>
    %110 = arith.truncf %109 : vector<32x128xf32> to vector<32x128xbf16>
    %c0_37 = arith.constant 0 : index
    %c0_38 = arith.constant 0 : index
    %111 = vector.load %arg4[%c0_37, %c0_38] : memref<128x32xbf16, #tpu.memory_space<vmem>>, vector<128x32xbf16>
    %cst_39 = arith.constant dense<0.000000e+00> : vector<32x32xf32>
    %112 = tpu.matmul %110, %111, %cst_39 {dimension_numbers = #tpu.dot_dimension_numbers<[1], [0], [0], [1], [0, 0, 1, 1], [], []>} : vector<32x128xbf16>, vector<128x32xbf16>, vector<32x32xf32> -> vector<32x32xf32>
    %113 = vector.broadcast %7 : vector<1x32xf32> to vector<32x32xf32>
    %114 = arith.addf %112, %113 : vector<32x32xf32>
    %115 = arith.addf %91, %114 : vector<32x32xf32>
    %cst_40 = arith.constant dense<0.000000e+00> : vector<32xf32>
    %116 = vector.multi_reduction <add>, %115, %cst_40 [1] : vector<32x32xf32> to vector<32xf32>
    %117 = vector.shape_cast %116 : vector<32xf32> to vector<32x1xf32>
    %cst_41 = arith.constant 3.200000e+01 : f32
    %118 = vector.broadcast %cst_41 : f32 to vector<32x1xf32>
    %119 = arith.divf %117, %118 : vector<32x1xf32>
    %120 = vector.broadcast %119 : vector<32x1xf32> to vector<32x32xf32>
    %121 = arith.subf %115, %120 : vector<32x32xf32>
    %122 = arith.mulf %121, %121 : vector<32x32xf32>
    %cst_42 = arith.constant dense<0.000000e+00> : vector<32xf32>
    %123 = vector.multi_reduction <add>, %122, %cst_42 [1] : vector<32x32xf32> to vector<32xf32>
    %124 = vector.shape_cast %123 : vector<32xf32> to vector<32x1xf32>
    %cst_43 = arith.constant 3.200000e+01 : f32
    %125 = vector.broadcast %cst_43 : f32 to vector<32x1xf32>
    %126 = arith.divf %124, %125 : vector<32x1xf32>
    %127 = vector.broadcast %119 : vector<32x1xf32> to vector<32x32xf32>
    %128 = arith.subf %115, %127 : vector<32x32xf32>
    %cst_44 = arith.constant 9.99999996E-13 : f32
    %129 = vector.broadcast %cst_44 : f32 to vector<32x1xf32>
    %130 = arith.addf %126, %129 : vector<32x1xf32>
    %131 = math.rsqrt %130 : vector<32x1xf32>
    %132 = vector.broadcast %131 : vector<32x1xf32> to vector<32x32xf32>
    %133 = arith.mulf %128, %132 : vector<32x32xf32>
    %134 = vector.broadcast %10 : vector<1x32xf32> to vector<32x32xf32>
    %135 = arith.mulf %133, %134 : vector<32x32xf32>
    %136 = vector.broadcast %11 : vector<1x32xf32> to vector<32x32xf32>
    %137 = arith.addf %135, %136 : vector<32x32xf32>
    %138 = tpu.iota {dimensions = array<i32: 0>} : vector<4x32xi32>
    %139 = tpu.iota {dimensions = array<i32: 1>} : vector<4x32xi32>
    %c8_i32_45 = arith.constant 8 : i32
    %140 = vector.broadcast %c8_i32_45 : i32 to vector<4x32xi32>
    %141 = arith.muli %138, %140 : vector<4x32xi32>
    %142 = arith.cmpi sge, %139, %141 : vector<4x32xi32>
    %c1_i32_46 = arith.constant 1 : i32
    %143 = vector.broadcast %c1_i32_46 : i32 to vector<4x32xi32>
    %144 = arith.addi %138, %143 : vector<4x32xi32>
    %c8_i32_47 = arith.constant 8 : i32
    %145 = vector.broadcast %c8_i32_47 : i32 to vector<4x32xi32>
    %146 = arith.muli %144, %145 : vector<4x32xi32>
    %147 = arith.cmpi slt, %139, %146 : vector<4x32xi32>
    %148 = arith.andi %142, %147 : vector<4x32xi1>
    %cst_48 = arith.constant 1.250000e-01 : f32
    %cst_49 = arith.constant 0.000000e+00 : f32
    %149 = vector.broadcast %cst_48 : f32 to vector<4x32xf32>
    %150 = vector.broadcast %cst_49 : f32 to vector<4x32xf32>
    %151 = arith.select %148, %149, %150 : vector<4x32xi1>, vector<4x32xf32>
    %cst_50 = arith.constant dense<0.000000e+00> : vector<4x32xf32>
    %152 = tpu.matmul %151, %137, %cst_50 {dimension_numbers = #tpu.dot_dimension_numbers<[1], [0], [0], [1], [0, 0, 1, 1], [], []>} : vector<4x32xf32>, vector<32x32xf32>, vector<4x32xf32> -> vector<4x32xf32>
    %153 = vector.extract_strided_slice %152 {offsets = [0, 0], sizes = [2, 32], strides = [1, 1]} : vector<4x32xf32> to vector<2x32xf32>
    %c16 = arith.constant 16 : index
    %c0_51 = arith.constant 0 : index
    %154 = vector.load %arg5[%c16, %c0_51] : memref<64x128xf32, #tpu.memory_space<vmem>>, vector<32x5xf32>
    %c48 = arith.constant 48 : index
    %c0_52 = arith.constant 0 : index
    %155 = vector.load %arg5[%c48, %c0_52] : memref<64x128xf32, #tpu.memory_space<vmem>>, vector<1x5xf32>
    %c49 = arith.constant 49 : index
    %c0_53 = arith.constant 0 : index
    %156 = vector.load %arg5[%c49, %c0_53] : memref<64x128xf32, #tpu.memory_space<vmem>>, vector<5x6xf32>
    %c54 = arith.constant 54 : index
    %c0_54 = arith.constant 0 : index
    %157 = vector.load %arg5[%c54, %c0_54] : memref<64x128xf32, #tpu.memory_space<vmem>>, vector<1x6xf32>
    %c55 = arith.constant 55 : index
    %c0_55 = arith.constant 0 : index
    %158 = vector.load %arg5[%c55, %c0_55] : memref<64x128xf32, #tpu.memory_space<vmem>>, vector<5x32xf32>
    %cst_56 = arith.constant dense<0.000000e+00> : vector<2x5xf32>
    %159 = tpu.matmul %153, %154, %cst_56 {dimension_numbers = #tpu.dot_dimension_numbers<[1], [0], [0], [1], [0, 0, 1, 1], [], []>} : vector<2x32xf32>, vector<32x5xf32>, vector<2x5xf32> -> vector<2x5xf32>
    %160 = vector.broadcast %155 : vector<1x5xf32> to vector<2x5xf32>
    %161 = arith.addf %159, %160 : vector<2x5xf32>
    %cst_57 = arith.constant dense<0.000000e+00> : vector<2x6xf32>
    %162 = tpu.matmul %161, %156, %cst_57 {dimension_numbers = #tpu.dot_dimension_numbers<[1], [0], [0], [1], [0, 0, 1, 1], [], []>} : vector<2x5xf32>, vector<5x6xf32>, vector<2x6xf32> -> vector<2x6xf32>
    %163 = vector.broadcast %157 : vector<1x6xf32> to vector<2x6xf32>
    %164 = arith.addf %162, %163 : vector<2x6xf32>
    %cst_58 = arith.constant dense<0xFF800000> : vector<2xf32>
    %165 = vector.multi_reduction <maximumf>, %161, %cst_58 [1] : vector<2x5xf32> to vector<2xf32>
    %166 = vector.shape_cast %165 : vector<2xf32> to vector<2x1xf32>
    %167 = vector.broadcast %166 : vector<2x1xf32> to vector<2x5xf32>
    %168 = arith.subf %161, %167 : vector<2x5xf32>
    %169 = math.exp %168 : vector<2x5xf32>
    %cst_59 = arith.constant dense<0.000000e+00> : vector<2xf32>
    %170 = vector.multi_reduction <add>, %169, %cst_59 [1] : vector<2x5xf32> to vector<2xf32>
    %171 = vector.shape_cast %170 : vector<2xf32> to vector<2x1xf32>
    %172 = vector.broadcast %171 : vector<2x1xf32> to vector<2x5xf32>
    %173 = arith.divf %169, %172 : vector<2x5xf32>
    %cst_60 = arith.constant dense<0.000000e+00> : vector<2x32xf32>
    %174 = tpu.matmul %173, %158, %cst_60 {dimension_numbers = #tpu.dot_dimension_numbers<[1], [0], [0], [1], [0, 0, 1, 1], [], []>} : vector<2x5xf32>, vector<5x32xf32>, vector<2x32xf32> -> vector<2x32xf32>
    %cst_61 = arith.constant 0.000000e+00 : f32
    %175 = vector.broadcast %cst_61 : f32 to vector<4x96xf32>
    %176 = tpu.concatenate %152, %175 in 1 : vector<4x32xf32>, vector<4x96xf32> -> vector<4x128xf32>
    %cst_62 = arith.constant 0.000000e+00 : f32
    %177 = vector.broadcast %cst_62 : f32 to vector<2x96xf32>
    %178 = tpu.concatenate %174, %177 in 1 : vector<2x32xf32>, vector<2x96xf32> -> vector<2x128xf32>
    %cst_63 = arith.constant 0.000000e+00 : f32
    %179 = vector.broadcast %cst_63 : f32 to vector<2x123xf32>
    %180 = tpu.concatenate %173, %179 in 1 : vector<2x5xf32>, vector<2x123xf32> -> vector<2x128xf32>
    %cst_64 = arith.constant 0.000000e+00 : f32
    %181 = vector.broadcast %cst_64 : f32 to vector<2x122xf32>
    %182 = tpu.concatenate %164, %181 in 1 : vector<2x6xf32>, vector<2x122xf32> -> vector<2x128xf32>
    %cst_65 = arith.constant 0.000000e+00 : f32
    %183 = vector.broadcast %cst_65 : f32 to vector<6x128xf32>
    %184 = tpu.concatenate %176, %178, %180, %182, %183 in 0 : vector<4x128xf32>, vector<2x128xf32>, vector<2x128xf32>, vector<2x128xf32>, vector<6x128xf32> -> vector<16x128xf32>
    %c0_66 = arith.constant 0 : index
    %c0_67 = arith.constant 0 : index
    %185 = vector.load %arg6[%c0_66, %c0_67] : memref<16x128xf32, #tpu.memory_space<vmem>>, vector<16x128xf32>
    tpu.vector_store %arg6[%c0_66, %c0_67], %184 {strides = array<i32>} : memref<16x128xf32, #tpu.memory_space<vmem>>, vector<16x128xf32>,
    return
  }
}

</mosaic_0001>

<bundles_post_ra>
// kernel: coral_forward.1
= control target key start
LH: loop header
LB: loop body
LE: loop exit
PB: predicated region body
PF: predicated region fallthrough
CT: control target
= control target key end

     0   :  { %vm68_vm0 = vcmask 261120   ;;  %v160_v5 = vlaneseq  ;;  %v2125_v18 = vmov 0.0   ;;  %s2126_s8 = smov 96   ;;  %s2127_s18 = smov 64   ;;  %vm2129_vm12 = vmmov 0   ;;  %s2641_s2 = inlined_call_operand.vmem [shape: bf16[32,128], index: 2, kind: input, shape index: {}]   ;;  %s2642_s0 = inlined_call_operand.vmem [shape: bf16[32,32], index: 0, kind: input, shape index: {}]   ;;  %s2643_s5 = inlined_call_operand.vmem [shape: f32[64,128], index: 5, kind: input, shape index: {}]   ;;  %s2644_s1 = inlined_call_operand.vmem [shape: f32[32,32], index: 1, kind: input, shape index: {}]   ;;  %s2645_s3 = inlined_call_operand.vmem [shape: bf16[32,128], index: 3, kind: input, shape index: {}]   ;;  %s2646_s4 = inlined_call_operand.vmem [shape: bf16[128,32], index: 4, kind: input, shape index: {}]   ;;  %s2647_s6 = inlined_call_operand.vmem [shape: f32[16,128], index: 6, kind: output, shape index: {}]  }
   0x1   :  { %v2168_v0 = vld [vmem:[%s2641_s2] sm:$0xff]   ;;  %v2173_v1 = vld [vmem:[%s2641_s2 + $0x8] sm:$0xff]   ;;  %s2124_s2 = smov 32   ;;  %vm1959_vm2 = vmpackc.low %vm68_vm0, %vm68_vm0 }
   0x2   :  { %1818 = vmatprep.subr.bf16.mxu1 %v2168_v0  ;;  %v2179_v2 = vld [vmem:[%s2642_s0] sm:$0xff]   ;;  %v2188_v4 = vld [vmem:[%s2642_s0 + $0x8] sm:$0xff]   ;;  %v2198_v6 = vand.u32 127, %v160_v5  ;;  %v31_v62 = vld [vmem:[%s2644_s1 + $0x18] sm:$0xff] }
   0x3   :  { %v1671_v3 = vld [vmem:[%s2643_s5 + $0x1] ss:$0 sm:$0xff]  ;;  %1819 = vmatpush3.bf16.msra.mxu1 %v2168_v0  ;;  %1822 = vmatprep.mubr.msk.bf16.mxu1 %vm68_vm0, %v2179_v2  ;;  %v1670_v7 = vld [vmem:[%s2643_s5] ss:$0 sm:$0xff]  ;;  %v29_v56 = vld [vmem:[%s2644_s1 + $0x8] sm:$0xff] }
   0x4   :  { %141 = vrot.lane.b32.xlu0 %v1671_v3, %s2124_s2  ;;  %1820 = vmatprep.subr.bf16.mxu1 %v2173_v1  ;;  %vm166_vm1 = vcmp.lt.s32.totalorder %v2198_v6, 8  ;;  %vm163_vm3 = vcmp.ge.s32.totalorder %v2198_v6, 8  ;;  %vm167_vm4 = vcmp.lt.s32.totalorder %v2198_v6, 16  ;;  %vm164_vm6 = vcmp.ge.s32.totalorder %v2198_v6, 16  ;;  %v28_v57 = vld [vmem:[%s2644_s1] sm:$0xff]  ;;  %v30_v3 = vld [vmem:[%s2644_s1 + $0x10] sm:$0xff] }
   0x5   :  { %v2218_v19 = vsel %vm166_vm1, 1.0, %v2125_v18  ;;  %vm171_vm5 = vmand %vm163_vm3, %vm167_vm4  ;;  %vm168_vm7 = vcmp.lt.s32.totalorder %v2198_v6, 24  ;;  %vm165_vm9 = vcmp.ge.s32.totalorder %v2198_v6, 24  ;;  %vm169_vm10 = vcmp.lt.s32.totalorder %v2198_v6, 32 }
   0x6   :  { %v2233_v40 = vsel %vm171_vm5, 1.0, %v2125_v18  ;;  %vm172_vm8 = vmand %vm164_vm6, %vm168_vm7  ;;  %vm1479_vm1 = vcmask 1044480   ;;  %vm1553_vm3 = vcmask 33792   ;;  %vm1644_vm4 = vcmask 48128  }
   0x7   :  { %1821 = vmatpush3.bf16.msra.mxu1 %v2173_v1  ;;  %v2246_v45 = vsel %vm172_vm8, 1.0, %v2125_v18  ;;  %vm173_vm11 = vmand %vm165_vm9, %vm169_vm10  ;;  %vm1656_vm5 = vcmask 1041408   ;;  %vm1652_vm6 = vcmask 1043456   ;;  %vm1654_vm7 = vcmask 1045504  }
   0x8   :  { %v2259_v50 = vsel %vm173_vm11, 1.0, %v2125_v18 }
   0xa   :  { %1823 = vmatmul.mubr.msk.bf16.vlgmr.msra.gmra.mrb[0].mxu1 %vm68_vm0, %v2188_v4 }
  0x76   :  { %v142_v8 = vpop.permute.xlu0 %141 }
  0xdd   :  { %v2203_v9 = vpop.f32.mrb[0].mxu1 }
  0xde   :  { %v130_v10 = vadd.f32 %v2203_v9, %v1670_v7  ;;  %v2207_v11 = vpop.f32.mrb[1].mxu1  ;;  %v146_v16 = vadd.f32 %v2203_v9, %v142_v8 }
  0xdf   :  { %v128_v12 = vadd.f32 %v1670_v7, %v2207_v11  ;;  %v2210_v13 = vpop.f32.mrb[2].mxu1  ;;  %v144_v21 = vadd.f32 %v142_v8, %v2207_v11 }
  0xe0   :  { %v131_v14 = vadd.f32 %v2210_v13, %v1670_v7  ;;  %v2213_v15 = vpop.f32.mrb[3].mxu1  ;;  %v147_v17 = vadd.f32 %v2210_v13, %v142_v8  ;;  %v134_v36 = vmul.f32 0.35355338, %v130_v10 }
  0xe1   :  { %v132_v20 = vmul.f32 0.35355338, %v128_v12  ;;  %v129_v22 = vadd.f32 %v1670_v7, %v2213_v15  ;;  %v145_v23 = vadd.f32 %v142_v8, %v2213_v15 }
  0xe2   :  { %v2001_v24 = vpack.i.bf16 %v147_v17, %v146_v16  ;;  %v135_v37 = vmul.f32 0.35355338, %v131_v14  ;;  %v184_v39 = vmul.f32 %v2218_v19, %v134_v36  ;;  %v188_v44 = vmul.f32 %v2233_v40, %v134_v36 }
  0xe3   :  { %v182_v25 = vmul.f32 %v2218_v19, %v132_v20  ;;  %v1996_v26 = vpack.i.bf16 %v145_v23, %v144_v21  ;;  %v133_v35 = vmul.f32 0.35355338, %v129_v22  ;;  %v186_v42 = vmul.f32 %v2233_v40, %v132_v20 }
  0xe4   :  { %2002 = vrot.lane.b32.xlu1 %v2001_v24, %s2126_s8  ;;  %v185_v41 = vmul.f32 %v2218_v19, %v135_v37  ;;  %v189_v46 = vmul.f32 %v2233_v40, %v135_v37  ;;  %v190_v47 = vmul.f32 %v2246_v45, %v132_v20  ;;  %v192_v49 = vmul.f32 %v2246_v45, %v134_v36 }
  0xe5   :  { %1834 = vmatprep.mubr.msk.f32.mxu1 %vm68_vm0, %v182_v25  ;;  %1997 = vrot.lane.b32.xlu0 %v1996_v26, %s2126_s8  ;;  %v183_v38 = vmul.f32 %v2218_v19, %v133_v35  ;;  %v187_v43 = vmul.f32 %v2233_v40, %v133_v35  ;;  %v191_v48 = vmul.f32 %v2246_v45, %v133_v35 }
  0xe6   :  { %v193_v51 = vmul.f32 %v2246_v45, %v135_v37  ;;  %v194_v52 = vmul.f32 %v2259_v50, %v132_v20  ;;  %v195_v53 = vmul.f32 %v2259_v50, %v133_v35  ;;  %v196_v54 = vmul.f32 %v2259_v50, %v134_v36 }
  0xe7   :  { %v197_v55 = vmul.f32 %v2259_v50, %v135_v37 }
 0x156   :  { %v2003_v27 = vpop.permute.xlu1 %2002 }
 0x157   :  { %v1998_v28 = vpop.permute.xlu0 %1997  ;;  %v2005_v29 = vunpack.i.h.bf16 %v2003_v27  ;;  %v2004_v30 = vunpack.i.l.bf16 %v2003_v27 }
 0x158   :  { %v2000_v31 = vunpack.i.h.bf16 %v1998_v28  ;;  %v1999_v32 = vunpack.i.l.bf16 %v1998_v28 }
 0x159   :  { %v1964_v34 = vpack.c.bf16 %v2005_v29, %v2004_v30 }
 0x15a   :  { %v1958_v33 = vpack.c.bf16 %v2000_v31, %v1999_v32 }
 0x15c   :  { %1960 = vmatprep.subr.msk.bf16.mxu1 %vm1959_vm2, %v1958_v33 }
 0x15d   :  { %1963 = vmatpush3.bf16.xpose.msk.msra.mxu1 %vm1959_vm2, %v1958_v33 }
 0x15e   :  { %1966 = vmatprep.subr.msk.bf16.mxu1 %vm1959_vm2, %v1964_v34 }
 0x165   :  { %1969 = vmatpush3.bf16.xpose.msk.msra.mxu1 %vm1959_vm2, %v1964_v34  ;;  %vm1475_vm2 = vcmask 39936  }
 0x16c   :  { %1835 = vmatmul.mubr.msk.f32.vlgmr.msra.gmra.mrb[4].mxu1 %vm68_vm0, %v183_v38 }
 0x16d   :  { %1837 = vmatprep.mubr.msk.f32.mxu1 %vm68_vm0, %v184_v39 }
 0x170   :  { %1838 = vmatmul.mubr.msk.f32.gmra.mrb[6].mxu1 %vm68_vm0, %v185_v41 }
 0x171   :  { %1840 = vmatprep.mubr.msk.f32.mxu1 %vm68_vm0, %v186_v42 }
 0x174   :  { %1841 = vmatmul.mubr.msk.f32.gmra.mrb[8].mxu1 %vm68_vm0, %v187_v43 }
 0x175   :  { %1843 = vmatprep.mubr.msk.f32.mxu1 %vm68_vm0, %v188_v44 }
 0x178   :  { %1844 = vmatmul.mubr.msk.f32.gmra.mrb[10].mxu1 %vm68_vm0, %v189_v46 }
 0x179   :  { %1846 = vmatprep.mubr.msk.f32.mxu1 %vm68_vm0, %v190_v47 }
 0x17c   :  { %1847 = vmatmul.mubr.msk.f32.gmra.mrb[12].mxu1 %vm68_vm0, %v191_v48 }
 0x17d   :  { %1849 = vmatprep.mubr.msk.f32.mxu1 %vm68_vm0, %v192_v49 }
 0x180   :  { %1850 = vmatmul.mubr.msk.f32.gmra.mrb[14].mxu1 %vm68_vm0, %v193_v51 }
 0x181   :  { %1852 = vmatprep.mubr.msk.f32.mxu1 %vm68_vm0, %v194_v52 }
 0x184   :  { %1853 = vmatmul.mubr.msk.f32.gmra.mrb[16].mxu1 %vm68_vm0, %v195_v53 }
 0x185   :  { %1855 = vmatprep.mubr.msk.f32.mxu1 %vm68_vm0, %v196_v54 }
 0x188   :  { %1856 = vmatmul.mubr.msk.f32.gmra.mrb[18].mxu1 %vm68_vm0, %v197_v55 }
 0x23f   :  { %v1836_v58 = vpop.f32.mrb[4].mxu1 }
 0x240   :  { %v2278_v59 = vadd.f32 %v1836_v58, %v29_v56  ;;  %v332_v60 = vpop.f32.mrb[5].mxu1 }
 0x241   :  { %v2280_v61 = vadd.f32 %v332_v60, %v28_v57 }
 0x242   :  { %v430_v63 = vsel %vm68_vm0, %v2278_v59, -inf }
 0x243   :  { %431 = vmax.xlane.f32.xlu0 %v430_v63  ;;  %v1839_v7 = vpop.f32.mrb[6].mxu1  ;;  %v427_v8 = vsel %vm68_vm0, %v2280_v61, -inf }
 0x244   :  { %v2292_v10 = vadd.f32 %v1839_v7, %v31_v62  ;;  %428 = vmax.xlane.f32.xlu1 %v427_v8  ;;  %v342_v12 = vpop.f32.mrb[7].mxu1 }
 0x245   :  { %v2294_v14 = vadd.f32 %v342_v12, %v30_v3 }
 0x246   :  { %v436_v16 = vsel %vm68_vm0, %v2292_v10, -inf }
 0x247   :  { %v1842_v17 = vpop.f32.mrb[8].mxu1  ;;  %v433_v20 = vsel %vm68_vm0, %v2294_v14, -inf }
 0x248   :  { %v2300_v21 = vadd.f32 %v1842_v17, %v29_v56  ;;  %437 = vmax.xlane.f32.xlu1 %v436_v16  ;;  %434 = vmax.xlane.f32.xlu0 %v433_v20  ;;  %v352_v22 = vpop.f32.mrb[9].mxu1 }
 0x249   :  { %v2302_v23 = vadd.f32 %v352_v22, %v28_v57 }
 0x24a   :  { %v442_v24 = vsel %vm68_vm0, %v2300_v21, -inf }
 0x24b   :  { %v1845_v25 = vpop.f32.mrb[10].mxu1  ;;  %v439_v26 = vsel %vm68_vm0, %v2302_v23, -inf }
 0x24c   :  { %v2308_v27 = vadd.f32 %v1845_v25, %v31_v62  ;;  %443 = vmax.xlane.f32.xlu1 %v442_v24  ;;  %440 = vmax.xlane.f32.xlu0 %v439_v26  ;;  %v362_v28 = vpop.f32.mrb[11].mxu1 }
 0x24d   :  { %v417_v29 = vadd.f32 %v362_v28, %v30_v3 }
 0x24e   :  { %v448_v30 = vsel %vm68_vm0, %v2308_v27, -inf }
 0x24f   :  { %v1848_v31 = vpop.f32.mrb[12].mxu1  ;;  %v445_v32 = vsel %vm68_vm0, %v417_v29, -inf }
 0x250   :  { %v2313_v33 = vadd.f32 %v1848_v31, %v29_v56  ;;  %449 = vmax.xlane.f32.xlu1 %v448_v30  ;;  %446 = vmax.xlane.f32.xlu0 %v445_v32  ;;  %v372_v34 = vpop.f32.mrb[13].mxu1 }
 0x251   :  { %v2315_v35 = vadd.f32 %v372_v34, %v28_v57 }
 0x252   :  { %v454_v36 = vsel %vm68_vm0, %v2313_v33, -inf }
 0x253   :  { %v1851_v37 = vpop.f32.mrb[14].mxu1  ;;  %v451_v38 = vsel %vm68_vm0, %v2315_v35, -inf }
 0x254   :  { %v2321_v39 = vadd.f32 %v1851_v37, %v31_v62  ;;  %455 = vmax.xlane.f32.xlu1 %v454_v36  ;;  %452 = vmax.xlane.f32.xlu0 %v451_v38  ;;  %v382_v41 = vpop.f32.mrb[15].mxu1 }
 0x255   :  { %v421_v42 = vadd.f32 %v382_v41, %v30_v3 }
 0x256   :  { %v460_v43 = vsel %vm68_vm0, %v2321_v39, -inf }
 0x257   :  { %v1854_v44 = vpop.f32.mrb[16].mxu1  ;;  %v457_v46 = vsel %vm68_vm0, %v421_v42, -inf }
 0x258   :  { %v2326_v47 = vadd.f32 %v1854_v44, %v29_v56  ;;  %461 = vmax.xlane.f32.xlu1 %v460_v43  ;;  %458 = vmax.xlane.f32.xlu0 %v457_v46  ;;  %v392_v48 = vpop.f32.mrb[17].mxu1 }
 0x259   :  { %v423_v49 = vadd.f32 %v392_v48, %v28_v57  ;;  %v1672_v57 = vld [vmem:[%s2643_s5 + $0x2] ss:$0 sm:$0xff] }
 0x25a   :  { %v466_v51 = vsel %vm68_vm0, %v2326_v47, -inf }
 0x25b   :  { %v1857_v52 = vpop.f32.mrb[18].mxu1  ;;  %v463_v53 = vsel %vm68_vm0, %v423_v49, -inf }
 0x25c   :  { %v2331_v54 = vadd.f32 %v1857_v52, %v31_v62  ;;  %467 = vmax.xlane.f32.xlu1 %v466_v51  ;;  %464 = vmax.xlane.f32.xlu0 %v463_v53  ;;  %v402_v55 = vpop.f32.mrb[19].mxu1 }
 0x25d   :  { %v2333_v58 = vadd.f32 %v402_v55, %v30_v3 }
 0x25e   :  { %v472_v56 = vsel %vm68_vm0, %v2331_v54, -inf }
 0x25f   :  { %v469_v60 = vsel %vm68_vm0, %v2333_v58, -inf }
 0x260   :  { %473 = vmax.xlane.f32.xlu1 %v472_v56  ;;  %470 = vmax.xlane.f32.xlu0 %v469_v60 }
 0x276   :  { %153 = vrot.lane.b32.xlu0 %v1672_v57, %s2127_s18 }
 0x2d0   :  { %v432_v62 = vpop.xlane.xlu0 %431 }
 0x2d1   :  { %v429_v36 = vpop.xlane.xlu1 %428  ;;  %v476_v37 = vsub.f32 %v2278_v59, %v432_v62 }
 0x2d2   :  { %v475_v41 = vsub.f32 %v2280_v61, %v429_v36 }
 0x2d3   :  { %v493_v38 = vmul.f32 1.442695, %v476_v37 }
 0x2d4   :  { %v491_v44 = vmul.f32 1.442695, %v475_v41 }
 0x2d5   :  { %v435_v63 = vpop.xlane.xlu0 %434  ;;  %v438_v43 = vpop.xlane.xlu1 %437 }
 0x2d9   :  { %v441_v7 = vpop.xlane.xlu0 %440  ;;  %v444_v46 = vpop.xlane.xlu1 %443 }
 0x2da   :  { %v480_v59 = vsub.f32 %v2300_v21, %v444_v46 }
 0x2dc   :  { %v501_v56 = vmul.f32 1.442695, %v480_v59 }
 0x2dd   :  { %v447_v8 = vpop.xlane.xlu0 %446  ;;  %v450_v55 = vpop.xlane.xlu1 %449 }
 0x2de   :  { %v481_v3 = vsub.f32 %v417_v29, %v447_v8  ;;  %v482_v21 = vsub.f32 %v2308_v27, %v450_v55 }
 0x2e0   :  { %v503_v12 = vmul.f32 1.442695, %v481_v3 }
 0x2e1   :  { %v2342_v16 = vpop.xlane.xlu0 %452  ;;  %v456_v60 = vpop.xlane.xlu1 %455 }
 0x2e2   :  { %2032 = vpow2.f32 %v503_v12 }
 0x2e3   :  { %2034 = vpow2.f32 %v493_v38 }
 0x2e4   :  { %2036 = vpow2.f32 %v491_v44 }
 0x2e5   :  { %v459_v17 = vpop.xlane.xlu0 %458  ;;  %v462_v27 = vpop.xlane.xlu1 %461 }
 0x2e9   :  { %v465_v20 = vpop.xlane.xlu0 %464 }
 0x2ea   :  { %v487_v51 = vsub.f32 %v423_v49, %v465_v20 }
 0x2ec   :  { %v2344_v22 = vpop.eup %2032  ;;  %v515_v61 = vmul.f32 1.442695, %v487_v51 }
 0x2ed   :  { %v2346_v24 = vpop.xlane.xlu0 %470  ;;  %v541_v25 = vsel %vm68_vm0, %v2344_v22, 0.0  ;;  %v2359_v53 = vpop.eup %2034 }
 0x2ee   :  { %542 = vadd.xlane.f32.xlu0 %v541_v25  ;;  %v483_v25 = vsub.f32 %v2315_v35, %v2342_v16  ;;  %v489_v38 = vsub.f32 %v2333_v58, %v2346_v24 }
 0x2f1   :  { %v154_v26 = vpop.permute.xlu0 %153 }
 0x2f2   :  { %v156_v28 = vadd.f32 %v154_v26, %v2207_v11  ;;  %v157_v30 = vadd.f32 %v154_v26, %v2213_v15  ;;  %v158_v29 = vadd.f32 %v2203_v9, %v154_v26  ;;  %v159_v31 = vadd.f32 %v2210_v13, %v154_v26 }
 0x2f3   :  { %v478_v11 = vsub.f32 %v2292_v10, %v438_v43  ;;  %v485_v15 = vsub.f32 %v421_v42, %v459_v17  ;;  %v477_v13 = vsub.f32 %v2294_v14, %v435_v63  ;;  %v479_v10 = vsub.f32 %v2302_v23, %v441_v7  ;;  %v2364_v14 = vpop.eup %2036 }
 0x2f4   :  { %v2006_v32 = vpack.i.bf16 %v157_v30, %v156_v28  ;;  %v2011_v34 = vpack.i.bf16 %v159_v31, %v158_v29  ;;  %v526_v42 = vsel %vm68_vm0, %v2359_v53, 0.0  ;;  %v523_v57 = vsel %vm68_vm0, %v2364_v14, 0.0  ;;  %v468_v31 = vpop.xlane.xlu1 %467 }
 0x2f5   :  { %v497_v9 = vmul.f32 1.442695, %v478_v11  ;;  %v511_v48 = vmul.f32 1.442695, %v485_v15  ;;  %v495_v52 = vmul.f32 1.442695, %v477_v13  ;;  %v484_v7 = vsub.f32 %v2313_v33, %v456_v60 }
 0x2f6   :  { %2007 = vrot.lane.b32.xlu1 %v2006_v32, %s2127_s18  ;;  %v499_v49 = vmul.f32 1.442695, %v479_v10  ;;  %v505_v23 = vmul.f32 1.442695, %v482_v21  ;;  %v507_v30 = vmul.f32 1.442695, %v483_v25  ;;  %v486_v29 = vsub.f32 %v2321_v39, %v462_v27 }
 0x2f7   :  { %2038 = vpow2.f32 %v497_v9  ;;  %v509_v20 = vmul.f32 1.442695, %v484_v7  ;;  %v519_v11 = vmul.f32 1.442695, %v489_v38 }
 0x2f8   :  { %2040 = vpow2.f32 %v511_v48  ;;  %v513_v16 = vmul.f32 1.442695, %v486_v29  ;;  %v474_v41 = vpop.xlane.xlu1 %473 }
 0x2f9   :  { %2042 = vpow2.f32 %v495_v52 }
 0x2fa   :  { %2044 = vpow2.f32 %v515_v61 }
 0x2fb   :  { %2046 = vpow2.f32 %v501_v56 }
 0x2fc   :  { %2048 = vpow2.f32 %v499_v49 }
 0x2fd   :  { %2050 = vpow2.f32 %v505_v23 }
 0x2fe   :  { %2052 = vpow2.f32 %v509_v20 }
 0x2ff   :  { %2054 = vpow2.f32 %v507_v30 }
 0x300   :  { %2056 = vpow2.f32 %v513_v16 }
 0x301   :  { %v2369_v62 = vpop.eup %2038 }
 0x302   :  { %v2371_v63 = vpop.eup %2040  ;;  %v532_v8 = vsel %vm68_vm0, %v2369_v62, 0.0 }
 0x303   :  { %v2376_v3 = vpop.eup %2042  ;;  %v553_v12 = vsel %vm68_vm0, %v2371_v63, 0.0 }
 0x304   :  { %2012 = vrot.lane.b32.xlu0 %v2011_v34, %s2127_s18  ;;  %v2380_v17 = vpop.eup %2044  ;;  %v529_v33 = vsel %vm68_vm0, %v2376_v3, 0.0  ;;  %v488_v34 = vsub.f32 %v2326_v47, %v468_v31  ;;  %v490_v47 = vsub.f32 %v2331_v54, %v474_v41 }
 0x305   :  { %v2386_v26 = vpop.eup %2046  ;;  %v559_v28 = vsel %vm68_vm0, %v2380_v17, 0.0 }
 0x306   :  { %v538_v32 = vsel %vm68_vm0, %v2386_v26, 0.0  ;;  %v2393_v35 = vpop.eup %2048  ;;  %v517_v39 = vmul.f32 1.442695, %v488_v34  ;;  %v521_v13 = vmul.f32 1.442695, %v490_v47 }
 0x307   :  { %v535_v36 = vsel %vm68_vm0, %v2393_v35, 0.0  ;;  %v2398_v37 = vpop.eup %2050 }
 0x308   :  { %v544_v43 = vsel %vm68_vm0, %v2398_v37, 0.0  ;;  %v2404_v44 = vpop.eup %2052  ;;  %2058 = vpow2.f32 %v517_v39 }
 0x309   :  { %v550_v15 = vsel %vm68_vm0, %v2404_v44, 0.0  ;;  %v2409_v9 = vpop.eup %2054  ;;  %2060 = vpow2.f32 %v519_v11 }
 0x30a   :  { %v547_v58 = vsel %vm68_vm0, %v2409_v9, 0.0  ;;  %v2413_v24 = vpop.eup %2056  ;;  %2062 = vpow2.f32 %v521_v13 }
 0x30b   :  { %v556_v46 = vsel %vm68_vm0, %v2413_v24, 0.0 }
 0x312   :  { %v2417_v54 = vpop.eup %2058 }
 0x313   :  { %v562_v48 = vsel %vm68_vm0, %v2417_v54, 0.0  ;;  %v2423_v51 = vpop.eup %2060 }
 0x314   :  { %v565_v52 = vsel %vm68_vm0, %v2423_v51, 0.0  ;;  %v2427_v59 = vpop.eup %2062 }
 0x315   :  { %v568_v61 = vsel %vm68_vm0, %v2427_v59, 0.0 }
 0x31a   :  { %527 = vadd.xlane.f32.xlu1 %v526_v42 }
 0x31e   :  { %524 = vadd.xlane.f32.xlu1 %v523_v57 }
 0x322   :  { %533 = vadd.xlane.f32.xlu1 %v532_v8 }
 0x323   :  { %554 = vadd.xlane.f32.xlu0 %v553_v12 }
 0x326   :  { %530 = vadd.xlane.f32.xlu1 %v529_v33 }
 0x327   :  { %560 = vadd.xlane.f32.xlu0 %v559_v28 }
 0x32a   :  { %539 = vadd.xlane.f32.xlu1 %v538_v32 }
 0x32e   :  { %536 = vadd.xlane.f32.xlu1 %v535_v36 }
 0x332   :  { %545 = vadd.xlane.f32.xlu1 %v544_v43 }
 0x336   :  { %551 = vadd.xlane.f32.xlu1 %v550_v15 }
 0x33a   :  { %548 = vadd.xlane.f32.xlu1 %v547_v58 }
 0x33d   :  { %864 = vrot.lane.b32.xlu0 %v2173_v1, %s2124_s2 }
 0x33e   :  { %557 = vadd.xlane.f32.xlu1 %v556_v46 }
 0x342   :  { %563 = vadd.xlane.f32.xlu1 %v562_v48 }
 0x346   :  { %566 = vadd.xlane.f32.xlu1 %v565_v52 }
 0x34a   :  { %569 = vadd.xlane.f32.xlu1 %v568_v61 }
 0x35b   :  { %862 = vrot.lane.b32.xlu1 %v2168_v0, %s2124_s2 }
 0x368   :  { %v2008_v1 = vpop.permute.xlu1 %2007 }
 0x369   :  { %v2010_v55 = vunpack.i.h.bf16 %v2008_v1  ;;  %v2009_v56 = vunpack.i.l.bf16 %v2008_v1 }
 0x36b   :  { %v1970_v10 = vpack.c.bf16 %v2010_v55, %v2009_v56 }
 0x36d   :  { %1971 = vmatprep.subr.bf16.mxu0 %v1970_v10 }
 0x36e   :  { %1973 = vmatpush3.bf16.msra.mxu0 %v1970_v10 }
 0x37b   :  { %v543_v42 = vpop.xlane.xlu0 %542 }
 0x37f   :  { %v2013_v49 = vpop.permute.xlu0 %2012 }
 0x380   :  { %v2015_v21 = vunpack.i.h.bf16 %v2013_v49  ;;  %v2014_v60 = vunpack.i.l.bf16 %v2013_v49 }
 0x382   :  { %v1974_v57 = vpack.c.bf16 %v2015_v21, %v2014_v60 }
 0x384   :  { %1975 = vmatprep.subr.bf16.mxu0 %v1974_v57 }
 0x385   :  { %1977 = vmatpush3.bf16.msra.mxu0 %v1974_v57 }
 0x3a7   :  { %v528_v23 = vpop.xlane.xlu1 %527 }
 0x3a8   :  { %2064 = vrcp.f32 %v528_v23 }
 0x3ab   :  { %v525_v7 = vpop.xlane.xlu1 %524 }
 0x3ac   :  { %2066 = vrcp.f32 %v525_v7 }
 0x3af   :  { %v534_v8 = vpop.xlane.xlu1 %533 }
 0x3b0   :  { %2068 = vrcp.f32 %v534_v8 }
 0x3b2   :  { %v2065_v27 = vpop.eup %2064 }
 0x3b3   :  { %v531_v0 = vpop.xlane.xlu1 %530  ;;  %v574_v33 = vmul.f32 %v2065_v27, %v2359_v53 }
 0x3b4   :  { %2070 = vrcp.f32 %v531_v0 }
 0x3b5   :  { %2072 = vrcp.f32 %v543_v42 }
 0x3b6   :  { %v2067_v12 = vpop.eup %2066 }
 0x3b7   :  { %v540_v20 = vpop.xlane.xlu1 %539  ;;  %v572_v25 = vmul.f32 %v2067_v12, %v2364_v14  ;;  %v555_v14 = vpop.xlane.xlu0 %554 }
 0x3b8   :  { %2074 = vrcp.f32 %v540_v20 }
 0x3b9   :  { %1866 = vmatprep.mubr.msk.f32.mxu0 %vm68_vm0, %v572_v25 }
 0x3ba   :  { %1867 = vmatmul.mubr.msk.f32.vlgmr.msra.gmra.mrb[0].mxu0 %vm68_vm0, %v574_v33  ;;  %v2069_v30 = vpop.eup %2068 }
 0x3bb   :  { %v537_v28 = vpop.xlane.xlu1 %536  ;;  %v578_v16 = vmul.f32 %v2069_v30, %v2369_v62  ;;  %v561_v43 = vpop.xlane.xlu0 %560 }
 0x3bc   :  { %2076 = vrcp.f32 %v537_v28 }
 0x3be   :  { %v2071_v29 = vpop.eup %2070 }
 0x3bf   :  { %v546_v31 = vpop.xlane.xlu1 %545  ;;  %v576_v32 = vmul.f32 %v2071_v29, %v2376_v3  ;;  %v2073_v34 = vpop.eup %2072 }
 0x3c0   :  { %2078 = vrcp.f32 %v546_v31  ;;  %v584_v62 = vmul.f32 %v2073_v34, %v2344_v22  ;;  %v865_v49 = vpop.permute.xlu0 %864 }
 0x3c1   :  { %1869 = vmatprep.mubr.msk.f32.mxu0 %vm68_vm0, %v576_v32  ;;  %2080 = vrcp.f32 %v555_v14 }
 0x3c2   :  { %1870 = vmatmul.mubr.msk.f32.gmra.mrb[2].mxu0 %vm68_vm0, %v578_v16  ;;  %v2075_v36 = vpop.eup %2074 }
 0x3c3   :  { %v552_v53 = vpop.xlane.xlu1 %551  ;;  %v582_v3 = vmul.f32 %v2075_v36, %v2386_v26 }
 0x3c4   :  { %2082 = vrcp.f32 %v552_v53 }
 0x3c6   :  { %v2077_v39 = vpop.eup %2076 }
 0x3c7   :  { %v549_v38 = vpop.xlane.xlu1 %548  ;;  %v580_v41 = vmul.f32 %v2077_v39, %v2393_v35 }
 0x3c8   :  { %2084 = vrcp.f32 %v549_v38 }
 0x3c9   :  { %1872 = vmatprep.mubr.msk.f32.mxu0 %vm68_vm0, %v580_v41  ;;  %2086 = vrcp.f32 %v561_v43 }
 0x3ca   :  { %v2079_v47 = vpop.eup %2078  ;;  %1873 = vmatmul.mubr.msk.f32.gmra.mrb[4].mxu0 %vm68_vm0, %v582_v3 }
 0x3cb   :  { %v558_v11 = vpop.xlane.xlu1 %557  ;;  %1875 = vmatprep.mubr.msk.f32.mxu0 %vm68_vm0, %v584_v62  ;;  %v586_v15 = vmul.f32 %v2079_v47, %v2398_v37  ;;  %v2081_v13 = vpop.eup %2080 }
 0x3cc   :  { %2088 = vrcp.f32 %v558_v11  ;;  %v592_v61 = vmul.f32 %v2081_v13, %v2371_v63 }
 0x3ce   :  { %1876 = vmatmul.mubr.msk.f32.gmra.mrb[6].mxu0 %vm68_vm0, %v586_v15  ;;  %v2083_v26 = vpop.eup %2082 }
 0x3cf   :  { %v564_v35 = vpop.xlane.xlu1 %563  ;;  %v590_v48 = vmul.f32 %v2083_v26, %v2404_v44 }
 0x3d0   :  { %2090 = vrcp.f32 %v564_v35 }
 0x3d2   :  { %v2085_v58 = vpop.eup %2084 }
 0x3d3   :  { %v567_v46 = vpop.xlane.xlu1 %566  ;;  %v588_v22 = vmul.f32 %v2085_v58, %v2409_v9  ;;  %v2087_v52 = vpop.eup %2086 }
 0x3d4   :  { %2092 = vrcp.f32 %v567_v46  ;;  %v596_v56 = vmul.f32 %v2087_v52, %v2380_v17 }
 0x3d5   :  { %1878 = vmatprep.mubr.msk.f32.mxu0 %vm68_vm0, %v588_v22 }
 0x3d6   :  { %v2089_v37 = vpop.eup %2088  ;;  %1879 = vmatmul.mubr.msk.f32.gmra.mrb[8].mxu0 %vm68_vm0, %v590_v48 }
 0x3d7   :  { %v570_v1 = vpop.xlane.xlu1 %569  ;;  %1881 = vmatprep.mubr.msk.f32.mxu0 %vm68_vm0, %v592_v61  ;;  %v594_v55 = vmul.f32 %v2089_v37, %v2413_v24 }
 0x3d8   :  { %2094 = vrcp.f32 %v570_v1 }
 0x3da   :  { %v2091_v9 = vpop.eup %2090  ;;  %1882 = vmatmul.mubr.msk.f32.gmra.mrb[10].mxu0 %vm68_vm0, %v594_v55 }
 0x3db   :  { %1884 = vmatprep.mubr.msk.f32.mxu0 %vm68_vm0, %v596_v56  ;;  %v598_v44 = vmul.f32 %v2091_v9, %v2417_v54  ;;  %v863_v17 = vpop.permute.xlu1 %862 }
 0x3dc   :  { %1890 = vmatprep.subr.bf16.mxu0 %v863_v17 }
 0x3dd   :  { %1891 = vmatpush3.bf16.msra.mxu0 %v863_v17 }
 0x3de   :  { %v2093_v10 = vpop.eup %2092  ;;  %1885 = vmatmul.mubr.msk.f32.gmra.mrb[12].mxu0 %vm68_vm0, %v598_v44  ;;  %1892 = vmatprep.subr.bf16.mxu0 %v865_v49 }
 0x3df   :  { %v600_v63 = vmul.f32 %v2093_v10, %v2423_v51 }
 0x3e1   :  { %1887 = vmatprep.mubr.msk.f32.mxu0 %vm68_vm0, %v600_v63  ;;  %1893 = vmatpush3.bf16.msra.mxu0 %v865_v49 }
 0x3e2   :  { %v2095_v42 = vpop.eup %2094 }
 0x3e3   :  { %v602_v24 = vmul.f32 %v2095_v42, %v2427_v59 }
 0x3e5   :  { %1888 = vmatmul.mubr.msk.f32.gmra.mrb[14].mxu0 %vm68_vm0, %v602_v24 }
 0x48d   :  { %v1868_v21 = vpop.f32.mrb[0].mxu0 }
 0x48e   :  { %v733_v54 = vpop.f32.mrb[1].mxu0  ;;  %v813_v23 = vmul.f32 %v1868_v21, %v2218_v19 }
 0x48f   :  { %v812_v51 = vmul.f32 %v2218_v19, %v733_v54 }
 0x490   :  { %v835_v27 = vsel %vm68_vm0, %v813_v23, 0.0  ;;  %v1713_v23 = vld [vmem:[%s2643_s5 + $0x3] ss:$0 sm:$0xff] }
 0x491   :  { %v828_v25 = vsel %vm68_vm0, %v812_v51, 0.0  ;;  %v923_v51 = vunpack.c.l.bf16 %v2179_v2 }
 0x495   :  { %v1871_v60 = vpop.f32.mrb[2].mxu0 }
 0x496   :  { %v743_v57 = vpop.f32.mrb[3].mxu0  ;;  %v815_v12 = vmul.f32 %v1871_v60, %v2218_v19 }
 0x497   :  { %v814_v33 = vmul.f32 %v2218_v19, %v743_v57 }
 0x498   :  { %v849_v53 = vsel %vm68_vm0, %v815_v12, 0.0  ;;  %v925_v12 = vunpack.c.l.bf16 %v2188_v4 }
 0x499   :  { %v842_v36 = vsel %vm68_vm0, %v814_v33, 0.0 }
 0x49d   :  { %v1874_v7 = vpop.f32.mrb[4].mxu0 }
 0x49e   :  { %v817_v8 = vmul.f32 %v1874_v7, %v2233_v40  ;;  %v753_v59 = vpop.f32.mrb[5].mxu0 }
 0x49f   :  { %v816_v0 = vmul.f32 %v2233_v40, %v753_v59 }
 0x4a0   :  { %v836_v20 = vsel %vm68_vm0, %v817_v8, 0.0 }
 0x4a1   :  { %v837_v28 = vadd.f32 %v836_v20, %v835_v27  ;;  %v829_v30 = vsel %vm68_vm0, %v816_v0, 0.0  ;;  %v1877_v29 = vpop.f32.mrb[6].mxu0 }
 0x4a2   :  { %v830_v31 = vadd.f32 %v829_v30, %v828_v25  ;;  %v819_v32 = vmul.f32 %v1877_v29, %v2233_v40  ;;  %v763_v16 = vpop.f32.mrb[7].mxu0 }
 0x4a3   :  { %v818_v14 = vmul.f32 %v2233_v40, %v763_v16 }
 0x4a4   :  { %v850_v34 = vsel %vm68_vm0, %v819_v32, 0.0 }
 0x4a5   :  { %v851_v39 = vadd.f32 %v850_v34, %v849_v53  ;;  %v843_v38 = vsel %vm68_vm0, %v818_v14, 0.0 }
 0x4a6   :  { %v844_v19 = vadd.f32 %v843_v38, %v842_v36 }
 0x4a9   :  { %v1880_v41 = vpop.f32.mrb[8].mxu0 }
 0x4aa   :  { %v821_v43 = vmul.f32 %v1880_v41, %v2246_v45  ;;  %v773_v3 = vpop.f32.mrb[9].mxu0 }
 0x4ab   :  { %v820_v62 = vmul.f32 %v2246_v45, %v773_v3 }
 0x4ac   :  { %v838_v47 = vsel %vm68_vm0, %v821_v43, 0.0 }
 0x4ad   :  { %v839_v11 = vadd.f32 %v838_v47, %v837_v28  ;;  %v831_v40 = vsel %vm68_vm0, %v820_v62, 0.0  ;;  %v1883_v15 = vpop.f32.mrb[10].mxu0  ;;  %v926_v28 = vunpack.c.h.bf16 %v2188_v4  ;;  %v2020_v4 = vld [vmem:[%s2645_s3] sm:$0xff]  }
 0x4ae   :  { %v832_v35 = vadd.f32 %v831_v40, %v830_v31  ;;  %v823_v13 = vmul.f32 %v1883_v15, %v2246_v45  ;;  %v783_v26 = vpop.f32.mrb[11].mxu0  ;;  %1898 = vmatprep.subr.bf16.mxu1 %v2020_v4 }
 0x4af   :  { %v822_v58 = vmul.f32 %v2246_v45, %v783_v26  ;;  %1899 = vmatpush3.bf16.msra.mxu1 %v2020_v4  ;;  %v2029_v4 = vld [vmem:[%s2646_s4 + $0x38] sm:$0xff]  }
 0x4b0   :  { %v852_v46 = vsel %vm68_vm0, %v823_v13, 0.0 }
 0x4b1   :  { %v853_v22 = vadd.f32 %v852_v46, %v851_v39  ;;  %v845_v48 = vsel %vm68_vm0, %v822_v58, 0.0  ;;  %v1886_v52 = vpop.f32.mrb[12].mxu0 }
 0x4b2   :  { %v846_v61 = vadd.f32 %v845_v48, %v844_v19  ;;  %v825_v37 = vmul.f32 %v1886_v52, %v2259_v50  ;;  %v793_v1 = vpop.f32.mrb[13].mxu0  ;;  %v2021_v52 = vld [vmem:[%s2645_s3 + $0x8] sm:$0xff]  }
 0x4b3   :  { %v824_v55 = vmul.f32 %v2259_v50, %v793_v1  ;;  %1900 = vmatprep.subr.bf16.mxu1 %v2021_v52 }
 0x4b4   :  { %v840_v56 = vsel %vm68_vm0, %v825_v37, 0.0  ;;  %1901 = vmatpush3.bf16.msra.mxu1 %v2021_v52 }
 0x4b5   :  { %v841_v9 = vadd.f32 %v840_v56, %v839_v11  ;;  %v833_v44 = vsel %vm68_vm0, %v824_v55, 0.0 }
 0x4b6   :  { %v834_v10 = vadd.f32 %v833_v44, %v832_v35 }
 0x4b8   :  { %v856_v63 = vpack.c.bf16 %v841_v9, %v834_v10  ;;  %v1889_v45 = vpop.f32.mrb[14].mxu0 }
 0x4b9   :  { %v827_v42 = vmul.f32 %v1889_v45, %v2259_v50  ;;  %v803_v24 = vpop.f32.mrb[15].mxu0 }
 0x4ba   :  { %v826_v17 = vmul.f32 %v2259_v50, %v803_v24  ;;  %1894 = vmatprep.mubr.msk.bf16.mxu0 %vm68_vm0, %v856_v63  ;;  %v924_v50 = vunpack.c.h.bf16 %v2179_v2 }
 0x4bb   :  { %v854_v49 = vsel %vm68_vm0, %v827_v42, 0.0 }
 0x4bc   :  { %v855_v21 = vadd.f32 %v854_v49, %v853_v22  ;;  %v847_v54 = vsel %vm68_vm0, %v826_v17, 0.0  ;;  %v1716_v49 = vld [vmem:[%s2643_s5 + $0x6] ss:$0 sm:$0xff] }
 0x4bd   :  { %v848_v60 = vadd.f32 %v847_v54, %v846_v61 }
 0x4bf   :  { %v857_v57 = vpack.c.bf16 %v855_v21, %v848_v60 }
 0x4c1   :  { %1895 = vmatmul.mubr.msk.bf16.vlgmr.msra.gmra.mrb[16].mxu0 %vm68_vm0, %v857_v57 }
 0x594   :  { %v1896_v7 = vpop.f32.mrb[16].mxu0 }
 0x595   :  { %v908_v8 = vpop.f32.mrb[17].mxu0  ;;  %v917_v59 = vadd.f32 %v1896_v7, %v1713_v23 }
 0x596   :  { %v909_v0 = vadd.f32 %v1713_v23, %v908_v8  ;;  %v1897_v27 = vpop.f32.mrb[18].mxu0 }
 0x597   :  { %v911_v20 = vpop.f32.mrb[19].mxu0  ;;  %v920_v30 = vadd.f32 %v1897_v27, %v1713_v23  ;;  %v929_v32 = vadd.f32 %v925_v12, %v917_v59 }
 0x598   :  { %v912_v25 = vadd.f32 %v1713_v23, %v911_v20  ;;  %v927_v33 = vadd.f32 %v923_v51, %v909_v0  ;;  %v1717_v51 = vld [vmem:[%s2643_s5 + $0x7] ss:$0 sm:$0xff] }
 0x599   :  { %v937_v2 = vsel %vm68_vm0, %v929_v32, 0.0  ;;  %v930_v14 = vadd.f32 %v926_v28, %v920_v30 }
 0x59a   :  { %v931_v29 = vsel %vm68_vm0, %v927_v33, 0.0  ;;  %v928_v31 = vadd.f32 %v924_v50, %v912_v25 }
 0x59b   :  { %932 = vadd.xlane.f32.xlu1 %v931_v29  ;;  %v940_v53 = vsel %vm68_vm0, %v930_v14, 0.0  ;;  %v2022_v29 = vld [vmem:[%s2646_s4] sm:$0xff]  }
 0x59c   :  { %v934_v16 = vsel %vm68_vm0, %v928_v31, 0.0  ;;  %1906 = vmatprep.subr.bf16.mxu0 %v2022_v29 }
 0x59d   :  { %935 = vadd.xlane.f32.xlu0 %v934_v16  ;;  %1907 = vmatpush3.bf16.msra.mxu0 %v2022_v29  ;;  %v2025_v16 = vld [vmem:[%s2646_s4 + $0x18] sm:$0xff]  }
 0x59f   :  { %938 = vadd.xlane.f32.xlu1 %v937_v2  ;;  %v2026_v2 = vld [vmem:[%s2646_s4 + $0x20] sm:$0xff]  }
 0x5a3   :  { %941 = vadd.xlane.f32.xlu1 %v940_v53  ;;  %v2028_v53 = vld [vmem:[%s2646_s4 + $0x30] sm:$0xff]  }
 0x628   :  { %v933_v34 = vpop.xlane.xlu1 %932 }
 0x629   :  { %v944_v36 = vmul.f32 0.03125, %v933_v34  ;;  %v1718_v34 = vld [vmem:[%s2643_s5 + $0x4] ss:$0 sm:$0xff] }
 0x62a   :  { %v936_v39 = vpop.xlane.xlu0 %935 }
 0x62b   :  { %v948_v38 = vsub.f32 %v927_v33, %v944_v36  ;;  %v945_v19 = vmul.f32 0.03125, %v936_v39 }
 0x62c   :  { %v939_v41 = vpop.xlane.xlu1 %938 }
 0x62d   :  { %v949_v43 = vsub.f32 %v928_v31, %v945_v19  ;;  %v946_v3 = vmul.f32 0.03125, %v939_v41  ;;  %v952_v62 = vmul.f32 %v948_v38, %v948_v38  ;;  %v2023_v31 = vld [vmem:[%s2646_s4 + $0x8] sm:$0xff]  }
 0x62e   :  { %1908 = vmatprep.subr.bf16.mxu0 %v2023_v31 }
 0x62f   :  { %v950_v47 = vsub.f32 %v929_v32, %v946_v3  ;;  %v956_v11 = vsel %vm68_vm0, %v952_v62, 0.0  ;;  %v953_v40 = vmul.f32 %v949_v43, %v949_v43  ;;  %1909 = vmatpush3.bf16.msra.mxu0 %v2023_v31  ;;  %v2024_v32 = vld [vmem:[%s2646_s4 + $0x10] sm:$0xff]  }
 0x630   :  { %957 = vadd.xlane.f32.xlu0 %v956_v11  ;;  %v942_v15 = vpop.xlane.xlu1 %941  ;;  %1910 = vmatprep.subr.bf16.mxu0 %v2024_v32 }
 0x631   :  { %v947_v35 = vmul.f32 0.03125, %v942_v15  ;;  %v959_v13 = vsel %vm68_vm0, %v953_v40, 0.0  ;;  %v954_v26 = vmul.f32 %v950_v47, %v950_v47 }
 0x632   :  { %960 = vadd.xlane.f32.xlu1 %v959_v13 }
 0x633   :  { %v951_v58 = vsub.f32 %v930_v14, %v947_v35  ;;  %v962_v46 = vsel %vm68_vm0, %v954_v26, 0.0  ;;  %1911 = vmatpush3.bf16.msra.mxu0 %v2024_v32  ;;  %v2027_v14 = vld [vmem:[%s2646_s4 + $0x28] sm:$0xff]  }
 0x634   :  { %963 = vadd.xlane.f32.xlu0 %v962_v46  ;;  %1912 = vmatprep.subr.bf16.mxu0 %v2025_v16 }
 0x635   :  { %v955_v22 = vmul.f32 %v951_v58, %v951_v58 }
 0x637   :  { %v965_v48 = vsel %vm68_vm0, %v955_v22, 0.0  ;;  %1913 = vmatpush3.bf16.msra.mxu0 %v2025_v16 }
 0x638   :  { %966 = vadd.xlane.f32.xlu1 %v965_v48  ;;  %1914 = vmatprep.subr.bf16.mxu0 %v2026_v2 }
 0x63b   :  { %1915 = vmatpush3.bf16.msra.mxu0 %v2026_v2 }
 0x63c   :  { %1916 = vmatprep.subr.bf16.mxu0 %v2027_v14 }
 0x63f   :  { %1917 = vmatpush3.bf16.msra.mxu0 %v2027_v14 }
 0x640   :  { %1918 = vmatprep.subr.bf16.mxu0 %v2028_v53 }
 0x643   :  { %1919 = vmatpush3.bf16.msra.mxu0 %v2028_v53 }
 0x644   :  { %1920 = vmatprep.subr.bf16.mxu0 %v2029_v4 }
 0x647   :  { %1921 = vmatpush3.bf16.msra.mxu0 %v2029_v4 }
 0x6bd   :  { %v958_v61 = vpop.xlane.xlu0 %957 }
 0x6be   :  { %v968_v37 = vmul.f32 0.03125, %v958_v61 }
 0x6bf   :  { %v961_v1 = vpop.xlane.xlu1 %960 }
 0x6c0   :  { %v972_v55 = vadd.f32 1e-12, %v968_v37  ;;  %v969_v56 = vmul.f32 0.03125, %v961_v1 }
 0x6c1   :  { %v964_v9 = vpop.xlane.xlu0 %963 }
 0x6c2   :  { %2096 = vrsqrt.f32 %v972_v55  ;;  %v973_v44 = vadd.f32 1e-12, %v969_v56  ;;  %v970_v10 = vmul.f32 0.03125, %v964_v9 }
 0x6c4   :  { %2098 = vrsqrt.f32 %v973_v44  ;;  %v974_v63 = vadd.f32 1e-12, %v970_v10 }
 0x6c5   :  { %v967_v45 = vpop.xlane.xlu1 %966 }
 0x6c6   :  { %2100 = vrsqrt.f32 %v974_v63  ;;  %v971_v42 = vmul.f32 0.03125, %v967_v45 }
 0x6c8   :  { %v975_v24 = vadd.f32 1e-12, %v971_v42 }
 0x6ca   :  { %2102 = vrsqrt.f32 %v975_v24 }
 0x6cc   :  { %v2097_v17 = vpop.eup %2096 }
 0x6cd   :  { %v980_v21 = vmul.f32 %v2097_v17, %v948_v38 }
 0x6ce   :  { %v2099_v54 = vpop.eup %2098 }
 0x6cf   :  { %v981_v60 = vmul.f32 %v2099_v54, %v949_v43  ;;  %v988_v57 = vmul.f32 %v1716_v49, %v980_v21 }
 0x6d0   :  { %v2101_v23 = vpop.eup %2100 }
 0x6d1   :  { %v982_v7 = vmul.f32 %v2101_v23, %v950_v47  ;;  %v989_v8 = vmul.f32 %v1716_v49, %v981_v60  ;;  %v2526_v50 = vadd.f32 %v1717_v51, %v988_v57 }
 0x6d3   :  { %v2528_v59 = vadd.f32 %v1717_v51, %v989_v8  ;;  %v990_v27 = vmul.f32 %v1716_v49, %v982_v7 }
 0x6d4   :  { %v2103_v0 = vpop.eup %2102 }
 0x6d5   :  { %v983_v12 = vmul.f32 %v2103_v0, %v951_v58  ;;  %v1000_v20 = vpack.c.bf16 %v2528_v59, %v2526_v50  ;;  %v2533_v33 = vadd.f32 %v1717_v51, %v990_v27 }
 0x6d7   :  { %v991_v25 = vmul.f32 %v1716_v49, %v983_v12  ;;  %1902 = vmatprep.mubr.msk.bf16.mxu1 %vm68_vm0, %v1000_v20 }
 0x6d9   :  { %v2535_v28 = vadd.f32 %v1717_v51, %v991_v25  ;;  %v1723_v25 = vld [vmem:[%s2643_s5 + $0x5] ss:$0 sm:$0xff] }
 0x6db   :  { %v1001_v30 = vpack.c.bf16 %v2535_v28, %v2533_v33 }
 0x6dd   :  { %1903 = vmatmul.mubr.msk.bf16.vlgmr.msra.gmra.mrb[20].mxu1 %vm68_vm0, %v1001_v30 }
 0x6de   :  { %1934 = vmatprep.mubr.msk.f32.mxu1 %vm2129_vm12, %v2125_v18 }
 0x7b0   :  { %v1904_v36 = vpop.f32.mrb[20].mxu1 }
 0x7b1   :  { %v1071_v39 = vadd.f32 %v1904_v36, %v1718_v34  ;;  %v1062_v38 = vpop.f32.mrb[21].mxu1 }
 0x7b2   :  { %v1063_v19 = vadd.f32 %v1718_v34, %v1062_v38  ;;  %v1905_v41 = vpop.f32.mrb[22].mxu1 }
 0x7b3   :  { %v1083_v43 = vmul.f32 0.044715, %v1071_v39  ;;  %v1074_v3 = vadd.f32 %v1905_v41, %v1718_v34  ;;  %v1065_v62 = vpop.f32.mrb[23].mxu1  ;;  %v1079_v21 = vmul.f32 0.5, %v1071_v39 }
 0x7b4   :  { %v1081_v47 = vmul.f32 0.044715, %v1063_v19  ;;  %v1066_v11 = vadd.f32 %v1718_v34, %v1065_v62  ;;  %v1077_v57 = vmul.f32 0.5, %v1063_v19 }
 0x7b5   :  { %v1087_v40 = vmul.f32 %v1083_v43, %v1071_v39  ;;  %v1084_v15 = vmul.f32 0.044715, %v1074_v3  ;;  %v1080_v54 = vmul.f32 0.5, %v1074_v3 }
 0x7b6   :  { %v1085_v35 = vmul.f32 %v1081_v47, %v1063_v19  ;;  %v1082_v13 = vmul.f32 0.044715, %v1066_v11  ;;  %v1078_v23 = vmul.f32 0.5, %v1066_v11 }
 0x7b7   :  { %v1091_v26 = vmul.f32 %v1087_v40, %v1071_v39  ;;  %v1088_v58 = vmul.f32 %v1084_v15, %v1074_v3 }
 0x7b8   :  { %v1089_v46 = vmul.f32 %v1085_v35, %v1063_v19  ;;  %v1086_v22 = vmul.f32 %v1082_v13, %v1066_v11 }
 0x7b9   :  { %v1095_v48 = vadd.f32 %v1091_v26, %v1071_v39  ;;  %v1092_v52 = vmul.f32 %v1088_v58, %v1074_v3 }
 0x7ba   :  { %v1090_v61 = vmul.f32 %v1086_v22, %v1066_v11  ;;  %v1093_v37 = vadd.f32 %v1089_v46, %v1063_v19 }
 0x7bb   :  { %v1099_v1 = vmul.f32 0.7978846, %v1095_v48  ;;  %v1096_v55 = vadd.f32 %v1092_v52, %v1074_v3 }
 0x7bc   :  { %v1094_v56 = vadd.f32 %v1090_v61, %v1066_v11  ;;  %v1097_v9 = vmul.f32 0.7978846, %v1093_v37 }
 0x7bd   :  { %2104 = vtanh.f32 %v1099_v1  ;;  %v1100_v44 = vmul.f32 0.7978846, %v1096_v55  ;;  %v2128_v1 = vmov 0.0|0.0  }
 0x7be   :  { %v1098_v10 = vmul.f32 0.7978846, %v1094_v56  ;;  %2106 = vtanh.f32 %v1097_v9  ;;  %1978 = vmatprep.subr.bf16.mxu1 %v2128_v1 }
 0x7bf   :  { %2108 = vtanh.f32 %v1100_v44 }
 0x7c0   :  { %2110 = vtanh.f32 %v1098_v10 }
 0x7c7   :  { %v2105_v63 = vpop.eup %2104 }
 0x7c8   :  { %v2107_v45 = vpop.eup %2106  ;;  %v1107_v42 = vadd.f32 1.0, %v2105_v63 }
 0x7c9   :  { %v2109_v24 = vpop.eup %2108  ;;  %v1105_v17 = vadd.f32 1.0, %v2107_v45 }
 0x7ca   :  { %v2111_v49 = vpop.eup %2110  ;;  %v1108_v60 = vadd.f32 1.0, %v2109_v24  ;;  %v1111_v7 = vmul.f32 %v1107_v42, %v1079_v21 }
 0x7cb   :  { %v1106_v51 = vadd.f32 1.0, %v2111_v49  ;;  %v1109_v0 = vmul.f32 %v1105_v17, %v1077_v57  ;;  %v1732_v57 = vld [vmem:[%s2643_s5 + $0x8] ss:$0 sm:$0xff] }
 0x7cc   :  { %v1112_v8 = vmul.f32 %v1108_v60, %v1080_v54  ;;  %v1305_v54 = vshrl.u32 %v160_v5, 7 }
 0x7cd   :  { %v1110_v27 = vmul.f32 %v1106_v51, %v1078_v23 }
 0x7ce   :  { %v1114_v12 = vpack.c.bf16 %v1112_v8, %v1111_v7  ;;  %v1308_v51 = vadd.s32 1, %v1305_v54 }
 0x7cf   :  { %v1113_v20 = vpack.c.bf16 %v1110_v27, %v1109_v0 }
 0x7d1   :  { %1922 = vmatprep.mubr.bf16.mxu0 %v1113_v20 }
 0x7d2   :  { %1923 = vmatmul.mubr.bf16.vlgmr.msra.gmra.mrb[20].mxu0 %v1114_v12  ;;  %v1733_v12 = vld [vmem:[%s2643_s5 + $0x9] ss:$0 sm:$0xff] }
 0x8a5   :  { %v1924_v30 = vpop.f32.mrb[20].mxu0 }
 0x8a6   :  { %v1217_v29 = vpop.f32.mrb[21].mxu0  ;;  %v1226_v31 = vadd.f32 %v1924_v30, %v1723_v25  ;;  %v1306_v30 = vmul.u32 8, %v1305_v54 }
 0x8a7   :  { %v1218_v32 = vadd.f32 %v1723_v25, %v1217_v29  ;;  %v1925_v16 = vpop.f32.mrb[22].mxu0  ;;  %v1309_v29 = vmul.u32 8, %v1308_v51 }
 0x8a8   :  { %v1220_v2 = vpop.f32.mrb[23].mxu0  ;;  %v1229_v14 = vadd.f32 %v1925_v16, %v1723_v25  ;;  %v1234_v39 = vadd.f32 %v1226_v31, %v2533_v33  ;;  %vm1307_vm13 = vcmp.ge.s32.totalorder %v2198_v6, %v1306_v30 }
 0x8a9   :  { %v1221_v53 = vadd.f32 %v1723_v25, %v1220_v2  ;;  %v1232_v4 = vadd.f32 %v1218_v32, %v2526_v50  ;;  %vm1310_vm14 = vcmp.lt.s32.totalorder %v2198_v6, %v1309_v29  ;;  %v1388_v6 = vld [vmem:[%s2643_s5 + $0x20] sm:$0xff] }
 0x8aa   :  { %v1235_v19 = vadd.f32 %v1229_v14, %v2535_v28  ;;  %v1242_v41 = vsel %vm68_vm0, %v1234_v39, 0.0  ;;  %vm1311_vm15 = vmand %vm1307_vm13, %vm1310_vm14 }
 0x8ab   :  { %v1236_v34 = vsel %vm68_vm0, %v1232_v4, 0.0  ;;  %v1233_v36 = vadd.f32 %v1221_v53, %v2528_v59 }
 0x8ac   :  { %1237 = vadd.xlane.f32.xlu0 %v1236_v34  ;;  %v1245_v43 = vsel %vm68_vm0, %v1235_v19, 0.0 }
 0x8ad   :  { %v1239_v38 = vsel %vm68_vm0, %v1233_v36, 0.0 }
 0x8ae   :  { %1240 = vadd.xlane.f32.xlu1 %v1239_v38 }
 0x8b0   :  { %1243 = vadd.xlane.f32.xlu0 %v1242_v41 }
 0x8b2   :  { %1246 = vadd.xlane.f32.xlu1 %v1245_v43  ;;  %v1389_v43 = vld [vmem:[%s2643_s5 + $0x28] sm:$0xff] }
 0x939   :  { %v1238_v3 = vpop.xlane.xlu0 %1237 }
 0x93a   :  { %v1248_v50 = vmul.f32 0.03125, %v1238_v3  ;;  %v1988_v3 = vpack.c.bf16 %v1389_v43, %v1388_v6 }
 0x93b   :  { %v1241_v62 = vpop.xlane.xlu1 %1240 }
 0x93c   :  { %v1252_v47 = vsub.f32 %v1232_v4, %v1248_v50  ;;  %v1249_v11 = vmul.f32 0.03125, %v1241_v62 }
 0x93d   :  { %v1244_v59 = vpop.xlane.xlu0 %1243 }
 0x93e   :  { %v1253_v40 = vsub.f32 %v1233_v36, %v1249_v11  ;;  %v1250_v33 = vmul.f32 0.03125, %v1244_v59  ;;  %v1256_v15 = vmul.f32 %v1252_v47, %v1252_v47  ;;  %v1386_v36 = vld [vmem:[%s2643_s5 + $0x10] sm:$0xff] }
 0x93f   :  { %v1247_v35 = vpop.xlane.xlu1 %1246  ;;  %v1735_v11 = vld [vmem:[%s2643_s5 + $0x30] ss:$0 sm:$0xff] }
 0x940   :  { %v1254_v13 = vsub.f32 %v1234_v39, %v1250_v33  ;;  %v1251_v26 = vmul.f32 0.03125, %v1247_v35  ;;  %v1260_v28 = vsel %vm68_vm0, %v1256_v15, 0.0  ;;  %v1257_v58 = vmul.f32 %v1253_v40, %v1253_v40  ;;  %v1387_v39 = vld [vmem:[%s2643_s5 + $0x18] sm:$0xff] }
 0x941   :  { %1261 = vadd.xlane.f32.xlu0 %v1260_v28  ;;  %v1985_v41 = vpack.c.bf16 %v1387_v39, %v1386_v36 }
 0x942   :  { %v1255_v46 = vsub.f32 %v1235_v19, %v1251_v26  ;;  %v1263_v22 = vsel %vm68_vm0, %v1257_v58, 0.0  ;;  %v1258_v48 = vmul.f32 %v1254_v13, %v1254_v13  ;;  %v1312_v19 = vsel %vm1311_vm15, 0.125, %v2125_v18 }
 0x943   :  { %1264 = vadd.xlane.f32.xlu1 %v1263_v22  ;;  %v1737_v22 = vld [vmem:[%s2643_s5 + $0x36] ss:$0 sm:$0xff] }
 0x944   :  { %v1266_v52 = vsel %vm68_vm0, %v1258_v48, 0.0  ;;  %v1259_v61 = vmul.f32 %v1255_v46, %v1255_v46 }
 0x945   :  { %1267 = vadd.xlane.f32.xlu0 %v1266_v52 }
 0x946   :  { %v1269_v37 = vsel %vm68_vm0, %v1259_v61, 0.0 }
 0x947   :  { %1270 = vadd.xlane.f32.xlu1 %v1269_v37 }
 0x9ce   :  { %v1262_v55 = vpop.xlane.xlu0 %1261 }
 0x9cf   :  { %v1272_v56 = vmul.f32 0.03125, %v1262_v55 }
 0x9d0   :  { %v1265_v9 = vpop.xlane.xlu1 %1264 }
 0x9d1   :  { %v1276_v44 = vadd.f32 1e-12, %v1272_v56  ;;  %v1273_v10 = vmul.f32 0.03125, %v1265_v9 }
 0x9d2   :  { %v1268_v63 = vpop.xlane.xlu0 %1267 }
 0x9d3   :  { %2112 = vrsqrt.f32 %v1276_v44  ;;  %v1277_v45 = vadd.f32 1e-12, %v1273_v10  ;;  %v1274_v42 = vmul.f32 0.03125, %v1268_v63 }
 0x9d4   :  { %v1271_v24 = vpop.xlane.xlu1 %1270 }
 0x9d5   :  { %2114 = vrsqrt.f32 %v1277_v45  ;;  %v1278_v17 = vadd.f32 1e-12, %v1274_v42  ;;  %v1275_v49 = vmul.f32 0.03125, %v1271_v24 }
 0x9d7   :  { %2116 = vrsqrt.f32 %v1278_v17  ;;  %v1279_v21 = vadd.f32 1e-12, %v1275_v49 }
 0x9d9   :  { %2118 = vrsqrt.f32 %v1279_v21 }
 0x9dd   :  { %v2113_v60 = vpop.eup %2112 }
 0x9de   :  { %v1284_v23 = vmul.f32 %v2113_v60, %v1252_v47  ;;  %v1391_v47 = vld [vmem:[%s2643_s5 + $0x31] sm:$0x1f] }
 0x9df   :  { %v2115_v7 = vpop.eup %2114 }
 0x9e0   :  { %v1285_v8 = vmul.f32 %v2115_v7, %v1253_v40  ;;  %v1292_v0 = vmul.f32 %v1732_v57, %v1284_v23 }
 0x9e1   :  { %v2117_v27 = vpop.eup %2116 }
 0x9e2   :  { %v1286_v20 = vmul.f32 %v2117_v27, %v1254_v13  ;;  %v1293_v25 = vmul.f32 %v1732_v57, %v1285_v8  ;;  %v1300_v32 = vadd.f32 %v1733_v12, %v1292_v0 }
 0x9e3   :  { %v2119_v5 = vpop.eup %2118 }
 0x9e4   :  { %v1287_v31 = vmul.f32 %v2119_v5, %v1255_v46  ;;  %v1301_v16 = vadd.f32 %v1733_v12, %v1293_v25  ;;  %v1294_v2 = vmul.f32 %v1732_v57, %v1286_v20  ;;  %v1393_v46 = vld [vmem:[%s2643_s5 + $0x37] sm:$0x1f] }
 0x9e6   :  { %v1979_v14 = vpack.c.bf16 %v1301_v16, %v1300_v32  ;;  %v1295_v53 = vmul.f32 %v1732_v57, %v1287_v31  ;;  %v1302_v4 = vadd.f32 %v1733_v12, %v1294_v2 }
 0x9e8   :  { %1980 = vmatpush3.bf16.msra.mxu1 %v1979_v14  ;;  %v1303_v34 = vadd.f32 %v1733_v12, %v1295_v53 }
 0x9e9   :  { %1981 = vmatprep.subr.bf16.mxu1 %v2128_v1 }
 0x9ea   :  { %v1982_v38 = vpack.c.bf16 %v1303_v34, %v1302_v4 }
 0x9ec   :  { %1983 = vmatpush3.bf16.msra.mxu1 %v1982_v38 }
 0x9ed   :  { %1984 = vmatprep.subr.bf16.mxu1 %v2128_v1 }
 0x9ef   :  { %1935 = vmatmul.mubr.msk.f32.vlgmr.msra.gmra.mrb[24].mxu1 %vm68_vm0, %v1312_v19 }
 0x9f0   :  { %1986 = vmatpush3.bf16.msra.mxu1 %v1985_v41  ;;  %1945 = vmatprep.mubr.msk.f32.mxu1 %vm2129_vm12, %v2125_v18 }
 0x9f1   :  { %1987 = vmatprep.subr.bf16.mxu1 %v2128_v1 }
 0x9f4   :  { %1989 = vmatpush3.bf16.msra.mxu1 %v1988_v3 }
 0x9f5   :  { %1948 = vmatprep.subr.mxu1 %v2125_v18 }
 0xac2   :  { %v1382_v50 = vpop.f32.mrb[24].mxu1 }
 0xac3   :  { %v1936_v62 = vpop.f32.mrb[25].mxu1  ;;  %1946 = vmatmul.mubr.msk.f32.vlgmr.msra.gmra.mrb[26].mxu1 %vm68_vm0, %v1382_v50  ;;  %v1641_v42 = vsel %vm68_vm0, %v1382_v50, 0.0 }
 0xac4   :  { %1950 = vmatprep.mubr.msk.f32.mxu1 %vm2129_vm12, %v2125_v18  ;;  %1949 = vmatpush3.msk.msra.mxu1 %vm1479_vm1, %v1391_v47 }
 0xac5   :  { %1953 = vmatprep.subr.mxu1 %v2125_v18 }
 0xb96   :  { %v1467_v59 = vpop.f32.mrb[26].mxu1 }
 0xb97   :  { %v1468_v40 = vadd.f32 %v1735_v11, %v1467_v59  ;;  %v1947_v33 = vpop.f32.mrb[27].mxu1 }
 0xb99   :  { %1951 = vmatmul.mubr.msk.f32.vlgmr.msra.gmra.mrb[28].mxu1 %vm1475_vm2, %v1468_v40  ;;  %v1554_v15 = vsel %vm1553_vm3, %v1468_v40, -inf }
 0xb9a   :  { %1555 = vmax.xlane.f32.xlu0 %v1554_v15  ;;  %1955 = vmatprep.mubr.msk.f32.mxu1 %vm2129_vm12, %v2125_v18 }
 0xb9b   :  { %1954 = vmatpush3.msk.msra.mxu1 %vm1479_vm1, %v1393_v46 }
 0xc27   :  { %v1556_v35 = vpop.xlane.xlu0 %1555 }
 0xc28   :  { %v1557_v13 = vsub.f32 %v1468_v40, %v1556_v35 }
 0xc2a   :  { %v1558_v26 = vmul.f32 1.442695, %v1557_v13 }
 0xc2c   :  { %2120 = vpow2.f32 %v1558_v26 }
 0xc36   :  { %v2121_v28 = vpop.eup %2120 }
 0xc37   :  { %v1560_v58 = vsel %vm1553_vm3, %v2121_v28, 0.0 }
 0xc38   :  { %1561 = vadd.xlane.f32.xlu1 %v1560_v58 }
 0xc6c   :  { %v1549_v48 = vpop.f32.mrb[28].mxu1 }
 0xc6d   :  { %v1550_v18 = vadd.f32 %v1737_v22, %v1549_v48  ;;  %v1952_v52 = vpop.f32.mrb[29].mxu1 }
 0xc6f   :  { %v1645_v61 = vsel %vm1644_vm4, %v1550_v18, 0.0 }
 0xc70   :  { %v1657_v37 = vsel %vm1656_vm5, %v1645_v61, 0.0 }
 0xc71   :  { %1659 = vst [vmem:[%s2647_s6 + $0x8] sm:$0xff] %v1657_v37 }
 0xcc5   :  { %v1562_v1 = vpop.xlane.xlu1 %1561 }
 0xcc6   :  { %2122 = vrcp.f32 %v1562_v1 }
 0xcd0   :  { %v2123_v55 = vpop.eup %2122 }
 0xcd1   :  { %v1564_v56 = vmul.f32 %v2123_v55, %v2121_v28 }
 0xcd3   :  { %1956 = vmatmul.mubr.msk.f32.vlgmr.msra.gmra.mrb[30].mxu1 %vm1475_vm2, %v1564_v56  ;;  %v1643_v44 = vsel %vm1475_vm2, %v1564_v56, 0.0 }
 0xcd4   :  { %v1650_v24 = vrot.slane %v1643_v44, 2 }
 0xda6   :  { %v1637_v9 = vpop.f32.mrb[30].mxu1 }
 0xda7   :  { %v1642_v10 = vsel %vm68_vm0, %v1637_v9, 0.0  ;;  %v1957_v63 = vpop.f32.mrb[31].mxu1 }
 0xda8   :  { %v1647_v45 = vrot.slane %v1642_v10, 4 }
 0xdaa   :  { %v1653_v17 = vsel %vm1652_vm6, %v1641_v42, %v1647_v45 }
 0xdab   :  { %v1655_v49 = vsel %vm1654_vm7, %v1653_v17, %v1650_v24 }
 0xdac   :  { %1658 = vst [vmem:[%s2647_s6] sm:$0xff] %v1655_v49 }

</bundles_post_ra>
